<compile_context>
chip_gen: v7x
topology: tpu7x:2x2x1
jax: 0.10.0
libtpu: 0.0.40
codegen_flags: <defaults>
</compile_context>

<pallas_src>
import numpy as np
import jax
import jax.numpy as jnp
from jax import lax
from jax.experimental import pallas as pl
from jax.experimental.pallas import tpu as pltpu

EPS = 1e-5


def _pads(W):
    """Left pad rounded up to a lane tile (aligned interior writes); right pad
    just large enough for the largest positive shift (W+1)."""
    pl_left = ((W + 1 + 127) // 128) * 128
    return pl_left, W + 1


def _is_pow2(v):
    return v > 0 and (v & (v - 1)) == 0


def _make_decoder_kernel(H, W, Cin, Cmid, Cout, Bt):
    N = H * W
    Nl = Bt * N
    PL, PR = _pads(W)

    def kernel(x_ref, w1_ref, b1_ref, w2_ref, b2_ref, wup_ref, b3_ref,
               o_ref, pad_ref):
        # ---- per-lane validity masks (computed once per grid step) ----------
        # They zero every lane whose source pixel falls outside its own image,
        # so the uninitialised pad columns / cross-image boundaries in the
        # shared scratch never contribute (no scratch zeroing needed at all).
        lane = lax.broadcasted_iota(jnp.int32, (1, Nl), 1)
        col = (lane & (W - 1)) if _is_pow2(W) else (lane % W)
        pos = (lane & (N - 1)) if _is_pow2(N) else (lane % N)
        m_l = col != 0            # source column j-1 exists
        m_r = col != (W - 1)      # source column j+1 exists
        m_t = pos >= W            # source row    i-1 exists
        m_b = pos < (N - W)       # source row    i+1 exists

        # 3x3 tap shifts / masks, hoisted once (tap t = kh*3 + kw)
        tap_shifts, tap_masks = [], []
        for kh in range(3):
            rm = m_t if kh == 0 else (m_b if kh == 2 else None)
            for kw in range(3):
                cm = m_l if kw == 0 else (m_r if kw == 2 else None)
                if rm is None:
                    mk = cm
                elif cm is None:
                    mk = rm
                else:
                    mk = jnp.logical_and(rm, cm)
                tap_shifts.append((kh - 1) * W + (kw - 1))
                tap_masks.append(mk)

        def window(c, s, mask):
            """(c, Nl) bf16 slab holding a[:, n + s]; invalid lanes zeroed."""
            v = pad_ref[0:c, PL + s: PL + s + Nl]
            if mask is not None:
                v = jnp.where(mask, v, 0.0)     # bitwise select; on v5e keep
            return v                            # this a select (no bf16 VALU)

        def im2col(c):
            return jnp.concatenate(
                [window(c, s, m) for s, m in zip(tap_shifts, tap_masks)],
                axis=0)                          # (9*c, Nl) bf16

        # ---- stage x into the shared padded scratch (bf16, per image) -------
        # lane offsets PL + b*N are multiples of 128 -> aligned stores.
        for b in range(Bt):
            pad_ref[0:Cin, PL + b * N: PL + (b + 1) * N] = x_ref[b]

        # ---- conv1(+bn1) fused with the 1x1 shortcut(+bn): one matmul -------
        acc1 = jnp.dot(w1_ref[...], im2col(Cin),
                       preferred_element_type=jnp.float32) + b1_ref[...]
        h1 = jnp.maximum(acc1[0:Cmid], 0.0)          # relu1
        idn = acc1[Cmid:2 * Cmid]                    # shortcut path

        # ---- conv2 (+bn2) ----------------------------------------------------
        pad_ref[0:Cmid, PL:PL + Nl] = h1.astype(jnp.bfloat16)
        h2 = jnp.dot(w2_ref[...], im2col(Cmid),
                     preferred_element_type=jnp.float32) + b2_ref[...]

        # ---- residual add + relu2 --------------------------------------------
        z = jnp.maximum(h2 + idn, 0.0)               # (Cmid, Nl) f32
        zb = z.astype(jnp.bfloat16)
        pad_ref[0:Cmid, PL:PL + Nl] = zb

        # ---- ConvTranspose2d(k3,s2,p1,op1) + bn3 + relu3: ONE matmul ---------
        # contraction slab order [z_dr; z_d; z_r; zb] matches the packed
        # (4*Cout, 4*Cmid) block weight; rows come out as [ee; oe; eo; oo].
        z_dr = window(Cmid, W + 1, jnp.logical_and(m_b, m_r))
        z_d = window(Cmid, W, m_b)
        z_r = window(Cmid, 1, m_r)
        slab = jnp.concatenate([z_dr, z_d, z_r, zb], axis=0)   # (4*Cmid, Nl)
        up = jnp.dot(wup_ref[...], slab,
                     preferred_element_type=jnp.float32) + b3_ref[...]

        # single lane-dense bf16 store of the whole output slab
        o_ref[0] = jnp.maximum(up, 0.0).astype(o_ref.dtype)

    return kernel


def _pack_params(params):
    """Fold BN scales into conv weights, fuse shortcut into conv1 and the four
    parity up-conv blocks into one weight, cast matmul operands to bf16."""
    (w1, s1, b1, w2, s2, b2, wsc, ssc, bsc, wup, s3, b3) = params
    cin, cmid = w1.shape[1], w1.shape[2]
    cout = wup.shape[2]

    def pack3x3(w, s):                       # (9, ci, co), (1, co) -> (co, 9*ci)
        wf = w * s.reshape(1, 1, -1)
        co = wf.shape[2]
        return jnp.transpose(wf, (2, 0, 1)).reshape(co, -1)

    # conv1 + shortcut fused: shortcut == centre tap (tap 4) of the im2col.
    w1p = pack3x3(w1, s1)                                       # (cmid, 9*cin)
    wscf = (wsc * ssc).T                                        # (cmid, cin)
    wsc_rows = jnp.zeros((cmid, 9 * cin), jnp.float32)
    wsc_rows = wsc_rows.at[:, 4 * cin:5 * cin].set(wscf)
    w1c = jnp.concatenate([w1p, wsc_rows], axis=0).astype(jnp.bfloat16)
    b1c = jnp.concatenate([b1.reshape(-1, 1), bsc.reshape(-1, 1)], axis=0)

    w2p = pack3x3(w2, s2).astype(jnp.bfloat16)                  # (cmid, 9*cmid)
    b2p = b2.reshape(-1, 1)

    # fused parity up-conv: rows [ee; oe; eo; oo], cols [z_dr | z_d | z_r | zb]
    wupf = wup * s3.reshape(1, 1, -1)                           # (9, cmid, cout)
    Wt = [wupf[t].T for t in range(9)]                          # (cout, cmid)
    Z = jnp.zeros((cout, cmid), jnp.float32)
    blocks = [
        [Z,     Z,     Z,     Wt[4]],     # ee: (2i,   2j)
        [Z,     Wt[1], Z,     Wt[7]],     # oe: (2i+1, 2j)
        [Z,     Z,     Wt[3], Wt[5]],     # eo: (2i,   2j+1)
        [Wt[0], Wt[2], Wt[6], Wt[8]],     # oo: (2i+1, 2j+1)
    ]
    wupc = jnp.concatenate([jnp.concatenate(r, axis=1) for r in blocks],
                           axis=0).astype(jnp.bfloat16)         # (4*cout, 4*cmid)
    b3p = jnp.tile(b3.reshape(-1, 1), (4, 1))                   # (4*cout, 1)

    return (w1c, b1c, w2p, b2p, wupc, b3p)


def decoder_forward(x_nchw, params):
    B, Cin, H, W = x_nchw.shape
    N = H * W
    packed = _pack_params(params)
    (w1c, b1c, w2p, b2p, wupc, b3p) = packed
    Cmid = w2p.shape[0]
    Cout = b3p.shape[0] // 4

    # Fold several images into the lane axis per grid step so every matmul
    # sees >= ~512 lanes (amortizes MXU weight staging + grid-step overhead).
    Bt = max(1, min(B, -(-512 // N)))
    while B % Bt:
        Bt -= 1
    G = B // Bt
    Nl = Bt * N
    PL, PR = _pads(W)
    Cmax = max(Cin, Cmid)

    # NCHW is already channel-major: (B, Cin, H*W) is a free reshape; bf16 in HBM.
    x = x_nchw.reshape(B, Cin, N).astype(jnp.bfloat16)

    kernel = _make_decoder_kernel(H, W, Cin, Cmid, Cout, Bt)

    def _full_spec(a):
        nd = a.ndim
        return pl.BlockSpec(a.shape, lambda g, nd=nd: (0,) * nd)

    w_bytes = sum(int(p.size) * p.dtype.itemsize for p in packed)
    flops = 2 * B * N * (2 * Cmid * 9 * Cin + 9 * Cmid * Cmid
                         + 4 * Cout * 4 * Cmid)
    bytes_accessed = B * Cin * N * 2 + B * 4 * Cout * N * 2 + w_bytes

    # VMEM requirement: double-buffered I/O blocks + (double-buffered) weights
    # + scratch + im2col/accumulator temporaries.  Only restrict the scoped
    # limit when we actually need more than the default.
    vmem_need = (2 * (Bt * Cin * N * 2 + 4 * Cout * Nl * 2)
                 + 2 * w_bytes
                 + Cmax * (PL + Nl + PR) * 2
                 + (9 * Cmax + 4 * Cmid) * Nl * 2
                 + (3 * Cmid + 4 * Cout) * Nl * 4)
    vmem_limit = None if vmem_need <= 12 * 1024 * 1024 else int(vmem_need * 3 // 2)

    out = pl.pallas_call(
        kernel,
        out_shape=jax.ShapeDtypeStruct((G, 4 * Cout, Nl), jnp.bfloat16),
        grid=(G,),
        in_specs=[pl.BlockSpec((Bt, Cin, N), lambda g: (g, 0, 0))]
                 + [_full_spec(a) for a in packed],
        out_specs=pl.BlockSpec((1, 4 * Cout, Nl), lambda g: (g, 0, 0)),
        scratch_shapes=[pltpu.VMEM((Cmax, PL + Nl + PR), jnp.bfloat16)],
        compiler_params=pltpu.CompilerParams(
            dimension_semantics=("parallel",),
            vmem_limit_bytes=vmem_limit),
        cost_estimate=pl.CostEstimate(flops=flops, transcendentals=0,
                                      bytes_accessed=bytes_accessed),
    )(x, *packed)

    # parity / batch un-interleave: rows are [ee|oe|eo|oo] Cout-blocks, lanes
    # are (Bt, H, W); one wrapper transpose (f32 cast fused into it).
    y = out.reshape(G, 2, 2, Cout, Bt, H, W)          # (g, c, a, co, bt, i, j)
    y = jnp.transpose(y, (0, 4, 3, 5, 2, 6, 1)).astype(jnp.float32)
    return y.reshape(B, Cout, 2 * H, 2 * W)           # NCHW


def init_params(key, cin, cmid, cout):
    keys = jax.random.split(key, 8)

    def bn(k, c):
        kg, kb, km, kv = jax.random.split(k, 4)
        gamma = jax.random.uniform(kg, (c,), jnp.float32, 0.5, 1.5)
        beta = 0.1 * jax.random.normal(kb, (c,), jnp.float32)
        mean = 0.1 * jax.random.normal(km, (c,), jnp.float32)
        var = jax.random.uniform(kv, (c,), jnp.float32, 0.5, 1.5)
        scale = gamma / jnp.sqrt(var + EPS)
        bias = beta - mean * scale
        return scale.reshape(1, c), bias.reshape(1, c)

    # conv weights stored as taps: (kh*3+kw, C_in, C_out)
    w1 = 0.2 * jax.random.normal(keys[0], (9, cin, cmid), jnp.float32)
    s1, b1 = bn(keys[1], cmid)
    w2 = 0.2 * jax.random.normal(keys[2], (9, cmid, cmid), jnp.float32)
    s2, b2 = bn(keys[3], cmid)
    wsc = 0.2 * jax.random.normal(keys[4], (cin, cmid), jnp.float32)
    ssc, bsc = bn(keys[5], cmid)
    wup = 0.2 * jax.random.normal(keys[6], (9, cmid, cout), jnp.float32)
    s3, b3 = bn(keys[7], cout)
    return (w1, s1, b1, w2, s2, b2, wsc, ssc, bsc, wup, s3, b3)


def decoder_reference(x_nchw, params):
    """Pure-JAX (XLA conv, HIGHEST precision) reference with identical semantics."""
    (w1, s1, b1, w2, s2, b2, wsc, ssc, bsc, wup, s3, b3) = params
    x = jnp.transpose(x_nchw, (0, 2, 3, 1)).astype(jnp.float32)
    Cin = x.shape[-1]
    Cmid = w1.shape[-1]
    Cout = wup.shape[-1]
    dn = ("NHWC", "HWIO", "NHWC")
    prec = lax.Precision.HIGHEST

    def bnb(a, s, b):
        return a * s.reshape(1, 1, 1, -1) + b.reshape(1, 1, 1, -1)

    def conv3(a, wt):
        w = wt.reshape(3, 3, wt.shape[1], wt.shape[2])
        return lax.conv_general_dilated(a, w, (1, 1), ((1, 1), (1, 1)),
                                        dimension_numbers=dn, precision=prec)

    h = jnp.maximum(bnb(conv3(x, w1), s1, b1), 0.0)
    h = bnb(conv3(h, w2), s2, b2)
    idn = lax.conv_general_dilated(x, wsc.reshape(1, 1, Cin, Cmid), (1, 1),
                                   ((0, 0), (0, 0)), dimension_numbers=dn,
                                   precision=prec)
    idn = bnb(idn, ssc, bsc)
    z = jnp.maximum(h + idn, 0.0)
    # ConvTranspose2d(3, stride=2, pad=1, output_padding=1) == dilated conv
    # with spatially flipped kernel and padding (1, 2).
    wu = wup.reshape(3, 3, Cmid, Cout)[::-1, ::-1]
    y = lax.conv_general_dilated(z, wu, (1, 1), ((1, 2), (1, 2)),
                                 lhs_dilation=(2, 2), dimension_numbers=dn,
                                 precision=prec)
    y = jnp.maximum(bnb(y, s3, b3), 0.0)
    return jnp.transpose(y, (0, 3, 1, 2))


if __name__ == "__main__":
    key = jax.random.PRNGKey(0)
    kx, kp = jax.random.split(key)
    B, Cin, Cmid, Cout, H, W = 2, 4, 8, 4, 16, 16

    x = jax.random.normal(kx, (B, Cin, H, W), jnp.float32)
    params = init_params(kp, Cin, Cmid, Cout)

    y = jax.jit(decoder_forward)(x, params)
    y = jax.block_until_ready(y)

    y_ref = decoder_reference(x, params)
    assert y.shape == (B, Cout, 2 * H, 2 * W), y.shape
    # tolerance sized for bf16 MXU operands / bf16 output store (f32 accum)
    # against an f32 HIGHEST-precision reference
    np.testing.assert_allclose(np.asarray(y), np.asarray(y_ref),
                               rtol=2e-2, atol=1e-1)
    print("KERNEL_OK")
</pallas_src>

<mosaic_0001>
module attributes {stable_mosaic.version = 11 : i64} {
  func.func @kernel(%arg0: i32, %arg1: memref<2x4x256xbf16, #tpu.memory_space<vmem>>, %arg2: memref<16x36xbf16, #tpu.memory_space<vmem>>, %arg3: memref<16x1xf32, #tpu.memory_space<vmem>>, %arg4: memref<8x72xbf16, #tpu.memory_space<vmem>>, %arg5: memref<8x1xf32, #tpu.memory_space<vmem>>, %arg6: memref<16x32xbf16, #tpu.memory_space<vmem>>, %arg7: memref<16x1xf32, #tpu.memory_space<vmem>>, %arg8: memref<1x16x512xbf16, #tpu.memory_space<vmem>>, %arg9: memref<8x657xbf16, #tpu.memory_space<vmem>>) attributes {dimension_semantics = [#tpu.dimension_semantics<parallel>], iteration_bounds = array<i64: 1>, scalar_prefetch = 0 : i64, scratch_operands = 1 : i64, tpu.core_type = #tpu.core_type<tc>, window_params = [{transform_indices = @transform_0, window_bounds = array<i64: 2, 4, 256>}, {pipeline_mode = #tpu.pipeline_mode<synchronous>, transform_indices = @transform_1, window_bounds = array<i64: 16, 36>}, {pipeline_mode = #tpu.pipeline_mode<synchronous>, transform_indices = @transform_2, window_bounds = array<i64: 16, 1>}, {pipeline_mode = #tpu.pipeline_mode<synchronous>, transform_indices = @transform_3, window_bounds = array<i64: 8, 72>}, {pipeline_mode = #tpu.pipeline_mode<synchronous>, transform_indices = @transform_4, window_bounds = array<i64: 8, 1>}, {pipeline_mode = #tpu.pipeline_mode<synchronous>, transform_indices = @transform_5, window_bounds = array<i64: 16, 32>}, {pipeline_mode = #tpu.pipeline_mode<synchronous>, transform_indices = @transform_6, window_bounds = array<i64: 16, 1>}, {transform_indices = @transform_7, window_bounds = array<i64: 1, 16, 512>}]} {
    %0 = tpu.iota {dimensions = array<i32: 1>} : vector<1x512xi32>
    %c15_i32 = arith.constant 15 : i32
    %1 = vector.broadcast %c15_i32 : i32 to vector<1x512xi32>
    %2 = arith.andi %0, %1 : vector<1x512xi32>
    %c255_i32 = arith.constant 255 : i32
    %3 = vector.broadcast %c255_i32 : i32 to vector<1x512xi32>
    %4 = arith.andi %0, %3 : vector<1x512xi32>
    %c0_i32 = arith.constant 0 : i32
    %5 = vector.broadcast %c0_i32 : i32 to vector<1x512xi32>
    %6 = arith.cmpi ne, %2, %5 : vector<1x512xi32>
    %c15_i32_0 = arith.constant 15 : i32
    %7 = vector.broadcast %c15_i32_0 : i32 to vector<1x512xi32>
    %8 = arith.cmpi ne, %2, %7 : vector<1x512xi32>
    %c16_i32 = arith.constant 16 : i32
    %9 = vector.broadcast %c16_i32 : i32 to vector<1x512xi32>
    %10 = arith.cmpi sge, %4, %9 : vector<1x512xi32>
    %c240_i32 = arith.constant 240 : i32
    %11 = vector.broadcast %c240_i32 : i32 to vector<1x512xi32>
    %12 = arith.cmpi slt, %4, %11 : vector<1x512xi32>
    %13 = arith.andi %10, %6 : vector<1x512xi1>
    %14 = arith.andi %10, %8 : vector<1x512xi1>
    %15 = arith.andi %12, %6 : vector<1x512xi1>
    %16 = arith.andi %12, %8 : vector<1x512xi1>
    %c0 = arith.constant 0 : index
    %c0_1 = arith.constant 0 : index
    %c0_2 = arith.constant 0 : index
    %17 = vector.load %arg1[%c0, %c0_1, %c0_2] : memref<2x4x256xbf16, #tpu.memory_space<vmem>>, vector<1x4x256xbf16>
    %18 = vector.shape_cast %17 : vector<1x4x256xbf16> to vector<4x256xbf16>
    %c0_3 = arith.constant 0 : index
    %c128 = arith.constant 128 : index
    %19 = vector.load %arg9[%c0_3, %c128] : memref<8x657xbf16, #tpu.memory_space<vmem>>, vector<4x256xbf16>
    tpu.vector_store %arg9[%c0_3, %c128], %18 {strides = array<i32>} : memref<8x657xbf16, #tpu.memory_space<vmem>>, vector<4x256xbf16>,
    %c1 = arith.constant 1 : index
    %c0_4 = arith.constant 0 : index
    %c0_5 = arith.constant 0 : index
    %20 = vector.load %arg1[%c1, %c0_4, %c0_5] : memref<2x4x256xbf16, #tpu.memory_space<vmem>>, vector<1x4x256xbf16>
    %21 = vector.shape_cast %20 : vector<1x4x256xbf16> to vector<4x256xbf16>
    %c0_6 = arith.constant 0 : index
    %c384 = arith.constant 384 : index
    %22 = vector.load %arg9[%c0_6, %c384] : memref<8x657xbf16, #tpu.memory_space<vmem>>, vector<4x256xbf16>
    tpu.vector_store %arg9[%c0_6, %c384], %21 {strides = array<i32>} : memref<8x657xbf16, #tpu.memory_space<vmem>>, vector<4x256xbf16>,
    %c0_7 = arith.constant 0 : index
    %c0_8 = arith.constant 0 : index
    %23 = vector.load %arg2[%c0_7, %c0_8] : memref<16x36xbf16, #tpu.memory_space<vmem>>, vector<16x36xbf16>
    %c0_9 = arith.constant 0 : index
    %c111 = arith.constant 111 : index
    %24 = vector.load %arg9[%c0_9, %c111] : memref<8x657xbf16, #tpu.memory_space<vmem>>, vector<4x512xbf16>
    %cst = arith.constant 0.000000e+00 : f32
    %25 = arith.truncf %cst : f32 to bf16
    %26 = vector.shape_cast %13 : vector<1x512xi1> to vector<1x512xi1>
    %27 = vector.broadcast %26 : vector<1x512xi1> to vector<4x512xi1>
    %28 = vector.broadcast %25 : bf16 to vector<4x512xbf16>
    %29 = arith.select %27, %24, %28 : vector<4x512xi1>, vector<4x512xbf16>
    %c0_10 = arith.constant 0 : index
    %c112 = arith.constant 112 : index
    %30 = vector.load %arg9[%c0_10, %c112] : memref<8x657xbf16, #tpu.memory_space<vmem>>, vector<4x512xbf16>
    %cst_11 = arith.constant 0.000000e+00 : f32
    %31 = arith.truncf %cst_11 : f32 to bf16
    %32 = vector.shape_cast %10 : vector<1x512xi1> to vector<1x512xi1>
    %33 = vector.broadcast %32 : vector<1x512xi1> to vector<4x512xi1>
    %34 = vector.broadcast %31 : bf16 to vector<4x512xbf16>
    %35 = arith.select %33, %30, %34 : vector<4x512xi1>, vector<4x512xbf16>
    %c0_12 = arith.constant 0 : index
    %c113 = arith.constant 113 : index
    %36 = vector.load %arg9[%c0_12, %c113] : memref<8x657xbf16, #tpu.memory_space<vmem>>, vector<4x512xbf16>
    %cst_13 = arith.constant 0.000000e+00 : f32
    %37 = arith.truncf %cst_13 : f32 to bf16
    %38 = vector.shape_cast %14 : vector<1x512xi1> to vector<1x512xi1>
    %39 = vector.broadcast %38 : vector<1x512xi1> to vector<4x512xi1>
    %40 = vector.broadcast %37 : bf16 to vector<4x512xbf16>
    %41 = arith.select %39, %36, %40 : vector<4x512xi1>, vector<4x512xbf16>
    %c0_14 = arith.constant 0 : index
    %c127 = arith.constant 127 : index
    %42 = vector.load %arg9[%c0_14, %c127] : memref<8x657xbf16, #tpu.memory_space<vmem>>, vector<4x512xbf16>
    %cst_15 = arith.constant 0.000000e+00 : f32
    %43 = arith.truncf %cst_15 : f32 to bf16
    %44 = vector.shape_cast %6 : vector<1x512xi1> to vector<1x512xi1>
    %45 = vector.broadcast %44 : vector<1x512xi1> to vector<4x512xi1>
    %46 = vector.broadcast %43 : bf16 to vector<4x512xbf16>
    %47 = arith.select %45, %42, %46 : vector<4x512xi1>, vector<4x512xbf16>
    %c0_16 = arith.constant 0 : index
    %c128_17 = arith.constant 128 : index
    %48 = vector.load %arg9[%c0_16, %c128_17] : memref<8x657xbf16, #tpu.memory_space<vmem>>, vector<4x512xbf16>
    %c0_18 = arith.constant 0 : index
    %c129 = arith.constant 129 : index
    %49 = vector.load %arg9[%c0_18, %c129] : memref<8x657xbf16, #tpu.memory_space<vmem>>, vector<4x512xbf16>
    %cst_19 = arith.constant 0.000000e+00 : f32
    %50 = arith.truncf %cst_19 : f32 to bf16
    %51 = vector.shape_cast %8 : vector<1x512xi1> to vector<1x512xi1>
    %52 = vector.broadcast %51 : vector<1x512xi1> to vector<4x512xi1>
    %53 = vector.broadcast %50 : bf16 to vector<4x512xbf16>
    %54 = arith.select %52, %49, %53 : vector<4x512xi1>, vector<4x512xbf16>
    %c0_20 = arith.constant 0 : index
    %c143 = arith.constant 143 : index
    %55 = vector.load %arg9[%c0_20, %c143] : memref<8x657xbf16, #tpu.memory_space<vmem>>, vector<4x512xbf16>
    %cst_21 = arith.constant 0.000000e+00 : f32
    %56 = arith.truncf %cst_21 : f32 to bf16
    %57 = vector.shape_cast %15 : vector<1x512xi1> to vector<1x512xi1>
    %58 = vector.broadcast %57 : vector<1x512xi1> to vector<4x512xi1>
    %59 = vector.broadcast %56 : bf16 to vector<4x512xbf16>
    %60 = arith.select %58, %55, %59 : vector<4x512xi1>, vector<4x512xbf16>
    %c0_22 = arith.constant 0 : index
    %c144 = arith.constant 144 : index
    %61 = vector.load %arg9[%c0_22, %c144] : memref<8x657xbf16, #tpu.memory_space<vmem>>, vector<4x512xbf16>
    %cst_23 = arith.constant 0.000000e+00 : f32
    %62 = arith.truncf %cst_23 : f32 to bf16
    %63 = vector.shape_cast %12 : vector<1x512xi1> to vector<1x512xi1>
    %64 = vector.broadcast %63 : vector<1x512xi1> to vector<4x512xi1>
    %65 = vector.broadcast %62 : bf16 to vector<4x512xbf16>
    %66 = arith.select %64, %61, %65 : vector<4x512xi1>, vector<4x512xbf16>
    %c0_24 = arith.constant 0 : index
    %c145 = arith.constant 145 : index
    %67 = vector.load %arg9[%c0_24, %c145] : memref<8x657xbf16, #tpu.memory_space<vmem>>, vector<4x512xbf16>
    %cst_25 = arith.constant 0.000000e+00 : f32
    %68 = arith.truncf %cst_25 : f32 to bf16
    %69 = vector.shape_cast %16 : vector<1x512xi1> to vector<1x512xi1>
    %70 = vector.broadcast %69 : vector<1x512xi1> to vector<4x512xi1>
    %71 = vector.broadcast %68 : bf16 to vector<4x512xbf16>
    %72 = arith.select %70, %67, %71 : vector<4x512xi1>, vector<4x512xbf16>
    %73 = tpu.concatenate %29, %35, %41, %47, %48, %54, %60, %66, %72 in 0 : vector<4x512xbf16>, vector<4x512xbf16>, vector<4x512xbf16>, vector<4x512xbf16>, vector<4x512xbf16>, vector<4x512xbf16>, vector<4x512xbf16>, vector<4x512xbf16>, vector<4x512xbf16> -> vector<36x512xbf16>
    %cst_26 = arith.constant dense<0.000000e+00> : vector<16x512xf32>
    %74 = tpu.matmul %23, %73, %cst_26 {dimension_numbers = #tpu.dot_dimension_numbers<[1], [0], [0], [1], [0, 0, 1, 1], [], []>} : vector<16x36xbf16>, vector<36x512xbf16>, vector<16x512xf32> -> vector<16x512xf32>
    %c0_27 = arith.constant 0 : index
    %c0_28 = arith.constant 0 : index
    %75 = vector.load %arg3[%c0_27, %c0_28] : memref<16x1xf32, #tpu.memory_space<vmem>>, vector<16x1xf32>
    %76 = vector.broadcast %75 : vector<16x1xf32> to vector<16x512xf32>
    %77 = arith.addf %74, %76 : vector<16x512xf32>
    %78 = vector.extract_strided_slice %77 {offsets = [0, 0], sizes = [8, 512], strides = [1, 1]} : vector<16x512xf32> to vector<8x512xf32>
    %cst_29 = arith.constant 0.000000e+00 : f32
    %79 = vector.broadcast %cst_29 : f32 to vector<8x512xf32>
    %80 = arith.maximumf %78, %79 : vector<8x512xf32>
    %81 = vector.extract_strided_slice %77 {offsets = [8, 0], sizes = [8, 512], strides = [1, 1]} : vector<16x512xf32> to vector<8x512xf32>
    %82 = arith.truncf %80 : vector<8x512xf32> to vector<8x512xbf16>
    %c0_30 = arith.constant 0 : index
    %c128_31 = arith.constant 128 : index
    %83 = vector.load %arg9[%c0_30, %c128_31] : memref<8x657xbf16, #tpu.memory_space<vmem>>, vector<8x512xbf16>
    tpu.vector_store %arg9[%c0_30, %c128_31], %82 {strides = array<i32>} : memref<8x657xbf16, #tpu.memory_space<vmem>>, vector<8x512xbf16>,
    %c0_32 = arith.constant 0 : index
    %c0_33 = arith.constant 0 : index
    %84 = vector.load %arg4[%c0_32, %c0_33] : memref<8x72xbf16, #tpu.memory_space<vmem>>, vector<8x72xbf16>
    %c0_34 = arith.constant 0 : index
    %c111_35 = arith.constant 111 : index
    %85 = vector.load %arg9[%c0_34, %c111_35] : memref<8x657xbf16, #tpu.memory_space<vmem>>, vector<8x512xbf16>
    %cst_36 = arith.constant 0.000000e+00 : f32
    %86 = arith.truncf %cst_36 : f32 to bf16
    %87 = vector.shape_cast %13 : vector<1x512xi1> to vector<1x512xi1>
    %88 = vector.broadcast %87 : vector<1x512xi1> to vector<8x512xi1>
    %89 = vector.broadcast %86 : bf16 to vector<8x512xbf16>
    %90 = arith.select %88, %85, %89 : vector<8x512xi1>, vector<8x512xbf16>
    %c0_37 = arith.constant 0 : index
    %c112_38 = arith.constant 112 : index
    %91 = vector.load %arg9[%c0_37, %c112_38] : memref<8x657xbf16, #tpu.memory_space<vmem>>, vector<8x512xbf16>
    %cst_39 = arith.constant 0.000000e+00 : f32
    %92 = arith.truncf %cst_39 : f32 to bf16
    %93 = vector.shape_cast %10 : vector<1x512xi1> to vector<1x512xi1>
    %94 = vector.broadcast %93 : vector<1x512xi1> to vector<8x512xi1>
    %95 = vector.broadcast %92 : bf16 to vector<8x512xbf16>
    %96 = arith.select %94, %91, %95 : vector<8x512xi1>, vector<8x512xbf16>
    %c0_40 = arith.constant 0 : index
    %c113_41 = arith.constant 113 : index
    %97 = vector.load %arg9[%c0_40, %c113_41] : memref<8x657xbf16, #tpu.memory_space<vmem>>, vector<8x512xbf16>
    %cst_42 = arith.constant 0.000000e+00 : f32
    %98 = arith.truncf %cst_42 : f32 to bf16
    %99 = vector.shape_cast %14 : vector<1x512xi1> to vector<1x512xi1>
    %100 = vector.broadcast %99 : vector<1x512xi1> to vector<8x512xi1>
    %101 = vector.broadcast %98 : bf16 to vector<8x512xbf16>
    %102 = arith.select %100, %97, %101 : vector<8x512xi1>, vector<8x512xbf16>
    %c0_43 = arith.constant 0 : index
    %c127_44 = arith.constant 127 : index
    %103 = vector.load %arg9[%c0_43, %c127_44] : memref<8x657xbf16, #tpu.memory_space<vmem>>, vector<8x512xbf16>
    %cst_45 = arith.constant 0.000000e+00 : f32
    %104 = arith.truncf %cst_45 : f32 to bf16
    %105 = vector.shape_cast %6 : vector<1x512xi1> to vector<1x512xi1>
    %106 = vector.broadcast %105 : vector<1x512xi1> to vector<8x512xi1>
    %107 = vector.broadcast %104 : bf16 to vector<8x512xbf16>
    %108 = arith.select %106, %103, %107 : vector<8x512xi1>, vector<8x512xbf16>
    %c0_46 = arith.constant 0 : index
    %c128_47 = arith.constant 128 : index
    %109 = vector.load %arg9[%c0_46, %c128_47] : memref<8x657xbf16, #tpu.memory_space<vmem>>, vector<8x512xbf16>
    %c0_48 = arith.constant 0 : index
    %c129_49 = arith.constant 129 : index
    %110 = vector.load %arg9[%c0_48, %c129_49] : memref<8x657xbf16, #tpu.memory_space<vmem>>, vector<8x512xbf16>
    %cst_50 = arith.constant 0.000000e+00 : f32
    %111 = arith.truncf %cst_50 : f32 to bf16
    %112 = vector.shape_cast %8 : vector<1x512xi1> to vector<1x512xi1>
    %113 = vector.broadcast %112 : vector<1x512xi1> to vector<8x512xi1>
    %114 = vector.broadcast %111 : bf16 to vector<8x512xbf16>
    %115 = arith.select %113, %110, %114 : vector<8x512xi1>, vector<8x512xbf16>
    %c0_51 = arith.constant 0 : index
    %c143_52 = arith.constant 143 : index
    %116 = vector.load %arg9[%c0_51, %c143_52] : memref<8x657xbf16, #tpu.memory_space<vmem>>, vector<8x512xbf16>
    %cst_53 = arith.constant 0.000000e+00 : f32
    %117 = arith.truncf %cst_53 : f32 to bf16
    %118 = vector.shape_cast %15 : vector<1x512xi1> to vector<1x512xi1>
    %119 = vector.broadcast %118 : vector<1x512xi1> to vector<8x512xi1>
    %120 = vector.broadcast %117 : bf16 to vector<8x512xbf16>
    %121 = arith.select %119, %116, %120 : vector<8x512xi1>, vector<8x512xbf16>
    %c0_54 = arith.constant 0 : index
    %c144_55 = arith.constant 144 : index
    %122 = vector.load %arg9[%c0_54, %c144_55] : memref<8x657xbf16, #tpu.memory_space<vmem>>, vector<8x512xbf16>
    %cst_56 = arith.constant 0.000000e+00 : f32
    %123 = arith.truncf %cst_56 : f32 to bf16
    %124 = vector.shape_cast %12 : vector<1x512xi1> to vector<1x512xi1>
    %125 = vector.broadcast %124 : vector<1x512xi1> to vector<8x512xi1>
    %126 = vector.broadcast %123 : bf16 to vector<8x512xbf16>
    %127 = arith.select %125, %122, %126 : vector<8x512xi1>, vector<8x512xbf16>
    %c0_57 = arith.constant 0 : index
    %c145_58 = arith.constant 145 : index
    %128 = vector.load %arg9[%c0_57, %c145_58] : memref<8x657xbf16, #tpu.memory_space<vmem>>, vector<8x512xbf16>
    %cst_59 = arith.constant 0.000000e+00 : f32
    %129 = arith.truncf %cst_59 : f32 to bf16
    %130 = vector.shape_cast %16 : vector<1x512xi1> to vector<1x512xi1>
    %131 = vector.broadcast %130 : vector<1x512xi1> to vector<8x512xi1>
    %132 = vector.broadcast %129 : bf16 to vector<8x512xbf16>
    %133 = arith.select %131, %128, %132 : vector<8x512xi1>, vector<8x512xbf16>
    %134 = tpu.concatenate %90, %96, %102, %108, %109, %115, %121, %127, %133 in 0 : vector<8x512xbf16>, vector<8x512xbf16>, vector<8x512xbf16>, vector<8x512xbf16>, vector<8x512xbf16>, vector<8x512xbf16>, vector<8x512xbf16>, vector<8x512xbf16>, vector<8x512xbf16> -> vector<72x512xbf16>
    %cst_60 = arith.constant dense<0.000000e+00> : vector<8x512xf32>
    %135 = tpu.matmul %84, %134, %cst_60 {dimension_numbers = #tpu.dot_dimension_numbers<[1], [0], [0], [1], [0, 0, 1, 1], [], []>} : vector<8x72xbf16>, vector<72x512xbf16>, vector<8x512xf32> -> vector<8x512xf32>
    %c0_61 = arith.constant 0 : index
    %c0_62 = arith.constant 0 : index
    %136 = vector.load %arg5[%c0_61, %c0_62] : memref<8x1xf32, #tpu.memory_space<vmem>>, vector<8x1xf32>
    %137 = vector.broadcast %136 : vector<8x1xf32> to vector<8x512xf32>
    %138 = arith.addf %135, %137 : vector<8x512xf32>
    %139 = arith.addf %138, %81 : vector<8x512xf32>
    %cst_63 = arith.constant 0.000000e+00 : f32
    %140 = vector.broadcast %cst_63 : f32 to vector<8x512xf32>
    %141 = arith.maximumf %139, %140 : vector<8x512xf32>
    %142 = arith.truncf %141 : vector<8x512xf32> to vector<8x512xbf16>
    %c0_64 = arith.constant 0 : index
    %c128_65 = arith.constant 128 : index
    %143 = vector.load %arg9[%c0_64, %c128_65] : memref<8x657xbf16, #tpu.memory_space<vmem>>, vector<8x512xbf16>
    tpu.vector_store %arg9[%c0_64, %c128_65], %142 {strides = array<i32>} : memref<8x657xbf16, #tpu.memory_space<vmem>>, vector<8x512xbf16>,
    %144 = arith.andi %12, %8 : vector<1x512xi1>
    %c0_66 = arith.constant 0 : index
    %c145_67 = arith.constant 145 : index
    %145 = vector.load %arg9[%c0_66, %c145_67] : memref<8x657xbf16, #tpu.memory_space<vmem>>, vector<8x512xbf16>
    %cst_68 = arith.constant 0.000000e+00 : f32
    %146 = arith.truncf %cst_68 : f32 to bf16
    %147 = vector.shape_cast %144 : vector<1x512xi1> to vector<1x512xi1>
    %148 = vector.broadcast %147 : vector<1x512xi1> to vector<8x512xi1>
    %149 = vector.broadcast %146 : bf16 to vector<8x512xbf16>
    %150 = arith.select %148, %145, %149 : vector<8x512xi1>, vector<8x512xbf16>
    %c0_69 = arith.constant 0 : index
    %c144_70 = arith.constant 144 : index
    %151 = vector.load %arg9[%c0_69, %c144_70] : memref<8x657xbf16, #tpu.memory_space<vmem>>, vector<8x512xbf16>
    %cst_71 = arith.constant 0.000000e+00 : f32
    %152 = arith.truncf %cst_71 : f32 to bf16
    %153 = vector.shape_cast %12 : vector<1x512xi1> to vector<1x512xi1>
    %154 = vector.broadcast %153 : vector<1x512xi1> to vector<8x512xi1>
    %155 = vector.broadcast %152 : bf16 to vector<8x512xbf16>
    %156 = arith.select %154, %151, %155 : vector<8x512xi1>, vector<8x512xbf16>
    %c0_72 = arith.constant 0 : index
    %c129_73 = arith.constant 129 : index
    %157 = vector.load %arg9[%c0_72, %c129_73] : memref<8x657xbf16, #tpu.memory_space<vmem>>, vector<8x512xbf16>
    %cst_74 = arith.constant 0.000000e+00 : f32
    %158 = arith.truncf %cst_74 : f32 to bf16
    %159 = vector.shape_cast %8 : vector<1x512xi1> to vector<1x512xi1>
    %160 = vector.broadcast %159 : vector<1x512xi1> to vector<8x512xi1>
    %161 = vector.broadcast %158 : bf16 to vector<8x512xbf16>
    %162 = arith.select %160, %157, %161 : vector<8x512xi1>, vector<8x512xbf16>
    %163 = tpu.concatenate %150, %156, %162, %142 in 0 : vector<8x512xbf16>, vector<8x512xbf16>, vector<8x512xbf16>, vector<8x512xbf16> -> vector<32x512xbf16>
    %c0_75 = arith.constant 0 : index
    %c0_76 = arith.constant 0 : index
    %164 = vector.load %arg6[%c0_75, %c0_76] : memref<16x32xbf16, #tpu.memory_space<vmem>>, vector<16x32xbf16>
    %cst_77 = arith.constant dense<0.000000e+00> : vector<16x512xf32>
    %165 = tpu.matmul %164, %163, %cst_77 {dimension_numbers = #tpu.dot_dimension_numbers<[1], [0], [0], [1], [0, 0, 1, 1], [], []>} : vector<16x32xbf16>, vector<32x512xbf16>, vector<16x512xf32> -> vector<16x512xf32>
    %c0_78 = arith.constant 0 : index
    %c0_79 = arith.constant 0 : index
    %166 = vector.load %arg7[%c0_78, %c0_79] : memref<16x1xf32, #tpu.memory_space<vmem>>, vector<16x1xf32>
    %167 = vector.broadcast %166 : vector<16x1xf32> to vector<16x512xf32>
    %168 = arith.addf %165, %167 : vector<16x512xf32>
    %cst_80 = arith.constant 0.000000e+00 : f32
    %169 = vector.broadcast %cst_80 : f32 to vector<16x512xf32>
    %170 = arith.maximumf %168, %169 : vector<16x512xf32>
    %171 = arith.truncf %170 : vector<16x512xf32> to vector<16x512xbf16>
    %c0_81 = arith.constant 0 : index
    %c0_82 = arith.constant 0 : index
    %c0_83 = arith.constant 0 : index
    %172 = vector.load %arg8[%c0_81, %c0_82, %c0_83] : memref<1x16x512xbf16, #tpu.memory_space<vmem>>, vector<1x16x512xbf16>
    %173 = vector.shape_cast %172 : vector<1x16x512xbf16> to vector<16x512xbf16>
    %174 = vector.shape_cast %171 : vector<16x512xbf16> to vector<1x16x512xbf16>
    tpu.vector_store %arg8[%c0_81, %c0_82, %c0_83], %174 {strides = array<i32>} : memref<1x16x512xbf16, #tpu.memory_space<vmem>>, vector<1x16x512xbf16>,
    return
  }
  func.func @transform_0(%arg0: i32) -> (i32, i32, i32) {
    %c0_i32 = arith.constant 0 : i32
    %c0_i32_0 = arith.constant 0 : i32
    %c0_i32_1 = arith.constant 0 : i32
    return %arg0, %c0_i32, %c0_i32_0 : i32, i32, i32
  }
  func.func @transform_1(%arg0: i32) -> (i32, i32) {
    %c0_i32 = arith.constant 0 : i32
    %c0_i32_0 = arith.constant 0 : i32
    %c0_i32_1 = arith.constant 0 : i32
    return %c0_i32, %c0_i32_0 : i32, i32
  }
  func.func @transform_2(%arg0: i32) -> (i32, i32) {
    %c0_i32 = arith.constant 0 : i32
    %c0_i32_0 = arith.constant 0 : i32
    %c0_i32_1 = arith.constant 0 : i32
    return %c0_i32, %c0_i32_0 : i32, i32
  }
  func.func @transform_3(%arg0: i32) -> (i32, i32) {
    %c0_i32 = arith.constant 0 : i32
    %c0_i32_0 = arith.constant 0 : i32
    %c0_i32_1 = arith.constant 0 : i32
    return %c0_i32, %c0_i32_0 : i32, i32
  }
  func.func @transform_4(%arg0: i32) -> (i32, i32) {
    %c0_i32 = arith.constant 0 : i32
    %c0_i32_0 = arith.constant 0 : i32
    %c0_i32_1 = arith.constant 0 : i32
    return %c0_i32, %c0_i32_0 : i32, i32
  }
  func.func @transform_5(%arg0: i32) -> (i32, i32) {
    %c0_i32 = arith.constant 0 : i32
    %c0_i32_0 = arith.constant 0 : i32
    %c0_i32_1 = arith.constant 0 : i32
    return %c0_i32, %c0_i32_0 : i32, i32
  }
  func.func @transform_6(%arg0: i32) -> (i32, i32) {
    %c0_i32 = arith.constant 0 : i32
    %c0_i32_0 = arith.constant 0 : i32
    %c0_i32_1 = arith.constant 0 : i32
    return %c0_i32, %c0_i32_0 : i32, i32
  }
  func.func @transform_7(%arg0: i32) -> (i32, i32, i32) {
    %c0_i32 = arith.constant 0 : i32
    %c0_i32_0 = arith.constant 0 : i32
    %c0_i32_1 = arith.constant 0 : i32
    return %arg0, %c0_i32, %c0_i32_0 : i32, i32, i32
  }
}

</mosaic_0001>

<bundles_post_ra>
// kernel: decoder_forward.1
= control target key start
LH: loop header
LB: loop body
LE: loop exit
PB: predicated region body
PF: predicated region fallthrough
CT: control target
= control target key end

     0   :  { %v29_v0 = vlaneseq  ;;  %v3078_v2 = vmov 0   ;;  %vm3062_vm2 = vmmov 1   ;;  %v3115_v19 = vmov 0  ;;  %s1886_s28 = smov 127   ;;  %s1887_s29 = smov 113   ;;  %s3054_s0 = inlined_call_operand.vmem [shape: bf16[2,4,256], index: 0, kind: input, shape index: {}]   ;;  %s3055_s1 = inlined_call_operand.vmem [shape: bf16[16,36], index: 1, kind: input, shape index: {}]   ;;  %s3056_s2 = inlined_call_operand.vmem [shape: f32[16,1], index: 2, kind: input, shape index: {}]   ;;  %s3057_s4 = inlined_call_operand.vmem [shape: f32[8,1], index: 4, kind: input, shape index: {}]   ;;  %s3058_s3 = inlined_call_operand.vmem [shape: bf16[8,72], index: 3, kind: input, shape index: {}]   ;;  %s3059_s5 = inlined_call_operand.vmem [shape: bf16[16,32], index: 5, kind: input, shape index: {}]   ;;  %s3060_s6 = inlined_call_operand.vmem [shape: f32[16,1], index: 6, kind: input, shape index: {}]   ;;  %s3061_s7 = inlined_call_operand.vmem [shape: bf16[1,16,512], index: 7, kind: output, shape index: {}]  }
   0x1   :  { %v1721_v1 = vld.sshfl [vmem:[%s3054_s0] sm:$0x33 pattern:$0x76325410]  ;;  %1870 = vset.pattern.permute.xlu0 %v3078_v2  ;;  %776 = vmatprep.mubr.bf16.mxu0 %v3078_v2  ;;  %v3123_v24 = vmov 0  ;;  %s1888_s30 = smov 1  }
   0x2   :  { %v30_v3 = vand.u32 127, %v29_v0  ;;  %84 = vst [vmem:[#allocation2 + $0x4] sm:$0x33] %v1721_v1  ;;  %819 = vmatprep.mubr.bf16.mxu1 %v3078_v2  ;;  %1871 = vset.pattern.permute.xlu1 %v3078_v2  ;;  %s1889_s8 = smov 16   ;;  %s1890_s9 = smov 15  }
   0x3   :  { %v1723_v4 = vld.sshfl [vmem:[%s3054_s0 + $0x4] sm:$0x33 pattern:$0x76325410]  ;;  %s1885_s0 = smov 112   ;;  %s1891_s10 = smov 17  }
   0x4   :  { %v38_v5 = vand.u32 255, %v30_v3  ;;  %v31_v6 = vadd.s32 128, %v30_v3  ;;  %v34_v7 = vand.u32 15, %v30_v3  ;;  %v32_v8 = vadd.s32 256, %v30_v3  ;;  %96 = vst [vmem:[#allocation2 + $0xc] sm:$0x33] %v1723_v4 }
   0x5   :  { %v33_v9 = vadd.s32 384, %v30_v3  ;;  %s1892_s11 = smov 111   ;;  %s1893_s12 = smov 126   ;;  %v2199_v25 = vld [vmem:[#allocation2 + $0x14] sm:$0x3] }
   0x6   :  { %vm1948_vm0 = vcmp.ge.s32.totalorder %v38_v5, 16  ;;  %v35_v11 = vand.u32 15, %v31_v6  ;;  %vm1952_vm1 = vcmp.ne.s32.totalorder %v34_v7, 0  ;;  %v40_v13 = vand.u32 255, %v32_v8  ;;  %s1894_s13 = smov 96   ;;  %s1895_s14 = smov 110  }
   0x7   :  { %vm139_vm3 = vmpackc.low %vm3062_vm2, %vm1948_vm0  ;;  %v36_v14 = vand.u32 15, %v32_v8  ;;  %v37_v15 = vand.u32 15, %v33_v9  ;;  %vm1959_vm4 = vcmp.ne.s32.totalorder %v34_v7, 15  ;;  %v39_v28 = vand.u32 255, %v31_v6  ;;  %s1896_s15 = smov 94   ;;  %s1897_s16 = smov 95  }
   0x8   :  { %v141_v17 = vsel %vm139_vm3, 65537, %v3078_v2  ;;  %vm1964_vm5 = vcmp.ne.s32.totalorder %v35_v11, 0  ;;  %vm1968_vm6 = vcmp.ge.s32.totalorder %v40_v13, 16  ;;  %vm62_vm7 = vmand %vm1948_vm0, %vm1959_vm4  ;;  %vm1989_vm11 = vcmp.ne.s32.totalorder %v35_v11, 15 }
   0x9   :  { %v3116_v19 = vsel %vm1968_vm6, 4294967295, %v3115_v19  ;;  %143 = vrot.lane.b32.xlu0 %v141_v17, %s1885_s0  ;;  %vm195_vm8 = vmpackc.low %vm1964_vm5, %vm1952_vm1  ;;  %vm1981_vm9 = vcmp.ne.s32.totalorder %v36_v14, 0  ;;  %vm1985_vm10 = vcmp.ne.s32.totalorder %v37_v15, 0  ;;  %vm1997_vm13 = vcmp.ne.s32.totalorder %v36_v14, 15  ;;  %v2101_v43 = vld [vmem:[#allocation2 + $0x4] sm:$0x33] }
   0xa   :  { %v197_v23 = vsel %vm195_vm8, 65537, %v3078_v2  ;;  %vm140_vm12 = vmpackc.low %vm3062_vm2, %vm1968_vm6  ;;  %v3124_v24 = vsel %vm1997_vm13, 4294967295, %v3123_v24  ;;  %vm2001_vm14 = vcmp.ne.s32.totalorder %v37_v15, 15  ;;  %v41_v29 = vand.u32 255, %v33_v9  ;;  %v2124_v52 = vld [vmem:[#allocation2] sm:$0x33] }
   0xb   :  { %199 = vrot.lane.b32.xlu1 %v197_v23, %s1886_s28  ;;  %v142_v26 = vsel %vm140_vm12, 65537, %v3078_v2  ;;  %vm196_vm15 = vmpackc.low %vm1985_vm10, %vm1981_vm9  ;;  %v1745_v45 = vcombine.high %v2101_v43, %v2101_v43  ;;  %v2108_v46 = vld [vmem:[#allocation2 + $0xc] sm:$0x33]  ;;  %v1744_v47 = vcombine.low %v2101_v43, %v2101_v43 }
   0xc   :  { %v198_v27 = vsel %vm196_vm15, 65537, %v3078_v2  ;;  %vm167_vm3 = vmpackc.low %vm1989_vm11, %vm62_vm7  ;;  %vm2035_vm15 = vcmp.lt.s32.totalorder %v39_v28, 240  ;;  %vm2041_vm2 = vcmp.lt.s32.totalorder %v41_v29, 240  ;;  %v1747_v48 = vcombine.high %v2108_v46, %v2108_v46  ;;  %v2163_v10 = vld [vmem:[#allocation2 + $0x10] sm:$0x3] }
   0xd   :  { %145 = vrot.lane.b32.xlu0 %v142_v26, %s1885_s0  ;;  %vm227_vm8 = vmpackc.low %vm2001_vm14, %vm1997_vm13  ;;  %v169_v30 = vsel %vm167_vm3, 65537, %v3078_v2  ;;  %v1746_v49 = vcombine.low %v2108_v46, %v2108_v46 }
   0xe   :  { %vm226_vm12 = vmpackc.low %vm1989_vm11, %vm1959_vm4  ;;  %v229_v31 = vsel %vm227_vm8, 65537, %v3078_v2 }
   0xf   :  { %201 = vrot.lane.b32.xlu1 %v198_v27, %s1886_s28  ;;  %vm64_vm7 = vmand %vm1968_vm6, %vm1997_vm13  ;;  %v228_v34 = vsel %vm226_vm12, 65537, %v3078_v2  ;;  %vm3131_vm6 = vmmov 1  }
  0x10   :  { %vm168_vm3 = vmpackc.low %vm2001_vm14, %vm64_vm7 }
  0x11   :  { %171 = vrot.lane.b32.xlu0 %v169_v30, %s1887_s29  ;;  %vm282_vm8 = vmpackc.low %vm2035_vm15, %vm3131_vm6  ;;  %v170_v35 = vsel %vm168_vm3, 65537, %v3078_v2 }
  0x12   :  { %vm283_vm13 = vmpackc.low %vm2041_vm2, %vm3131_vm6  ;;  %v284_v36 = vsel %vm282_vm8, 65537, %v3078_v2 }
  0x13   :  { %232 = vrot.lane.b32.xlu1 %v229_v31, %s1888_s30  ;;  %vm67_vm12 = vmand %vm2035_vm15, %vm1964_vm5  ;;  %v285_v37 = vsel %vm283_vm13, 65537, %v3078_v2 }
  0x14   :  { %vm69_vm7 = vmand %vm2041_vm2, %vm1985_vm10 }
  0x15   :  { %230 = vrot.lane.b32.xlu0 %v228_v34, %s1888_s30  ;;  %vm254_vm3 = vmpackc.low %vm67_vm12, %vm1952_vm1 }
  0x16   :  { %vm71_vm6 = vmand %vm2035_vm15, %vm1989_vm11  ;;  %v256_v38 = vsel %vm254_vm3, 65537, %v3078_v2  ;;  %vm3132_vm15 = vnez %v3124_v24 }
  0x17   :  { %173 = vrot.lane.b32.xlu1 %v170_v35, %s1887_s29  ;;  %vm255_vm8 = vmpackc.low %vm69_vm7, %vm1981_vm9 }
  0x18   :  { %vm73_vm12 = vmand %vm2041_vm2, %vm2001_vm14  ;;  %v257_v39 = vsel %vm255_vm8, 65537, %v3078_v2  ;;  %vm3133_vm2 = vnez %v3116_v19 }
  0x19   :  { %286 = vrot.lane.b32.xlu0 %v284_v36, %s1889_s8  ;;  %vm310_vm13 = vmpackc.low %vm71_vm6, %vm1959_vm4 }
  0x1a   :  { %vm58_vm11 = vmand %vm1948_vm0, %vm1952_vm1  ;;  %v312_v40 = vsel %vm310_vm13, 65537, %v3078_v2  ;;  %vm3095_vm1 = vcmask 916480   ;;  %vm264_vm13 = vcmask 121856  }
  0x1b   :  { %288 = vrot.lane.b32.xlu1 %v285_v37, %s1889_s8  ;;  %vm311_vm7 = vmpackc.low %vm73_vm12, %vm3132_vm15  ;;  %vm3070_vm15 = vcmask 138240  }
  0x1c   :  { %vm60_vm14 = vmand %vm3133_vm2, %vm1981_vm9  ;;  %v313_v41 = vsel %vm311_vm7, 65537, %v3078_v2  ;;  %vm177_vm9 = vcmask 924672   ;;  %vm3100_vm7 = vcmask 1043456  }
  0x1d   :  { %258 = vrot.lane.b32.xlu0 %v256_v38, %s1890_s9  ;;  %vm110_vm4 = vmpackc.low %vm1964_vm5, %vm58_vm11  ;;  %vm3105_vm11 = vcmask 1039360  }
  0x1e   :  { %vm111_vm0 = vmpackc.low %vm1985_vm10, %vm60_vm14  ;;  %v112_v42 = vsel %vm110_vm4, 65537, %v3078_v2 }
  0x1f   :  { %260 = vrot.lane.b32.xlu1 %v257_v39, %s1890_s9  ;;  %v113_v44 = vsel %vm111_vm0, 65537, %v3078_v2 }
  0x21   :  { %314 = vrot.lane.b32.xlu0 %v312_v40, %s1891_s10 }
  0x23   :  { %316 = vrot.lane.b32.xlu1 %v313_v41, %s1891_s10 }
  0x25   :  { %114 = vrot.lane.b32.xlu0 %v112_v42, %s1892_s11 }
  0x27   :  { %116 = vrot.lane.b32.xlu1 %v113_v44, %s1892_s11 }
  0x29   :  { %447 = vrot.lane.b32.xlu0 %v1745_v45, %s1892_s11 }
  0x2b   :  { %445 = vrot.lane.b32.xlu1 %v1744_v47, %s1892_s11 }
  0x2d   :  { %451 = vrot.lane.b32.xlu0 %v1747_v48, %s1892_s11 }
  0x2f   :  { %449 = vrot.lane.b32.xlu1 %v1746_v49, %s1892_s11 }
  0x7b   :  { %v2121_v50 = vpop.permute.xlu0 %143 }
  0x7c   :  { %v147_v51 = vrot.slane %v2121_v50, 4 }
  0x7d   :  { %v2126_v53 = vpop.permute.xlu1 %199 }
  0x7e   :  { %v2132_v54 = vsel %vm3095_vm1, %v147_v51, %v2121_v50  ;;  %v203_v37 = vrot.slane %v2126_v53, 4 }
  0x7f   :  { %vm3068_vm5 = vcmp.ne.s16.totalorder %v2132_v54, 0  ;;  %v2135_v55 = vpop.permute.xlu0 %145 }
  0x80   :  { %v156_v56 = vsel %vm3068_vm5, %v2124_v52, 0  ;;  %v148_v63 = vrot.slane %v2135_v55, 4 }
  0x81   :  { %v2140_v57 = vpop.permute.xlu1 %201  ;;  %v1730_v58 = vcombine.high %v156_v56, %v156_v56  ;;  %v1729_v59 = vcombine.low %v156_v56, %v156_v56  ;;  %v1404_v56 = vld [vmem:[#allocation2 + $0x14] sm:$0xf] }
  0x82   :  { %vm2151_vm10 = vcmp.ne.s16.totalorder %v148_v63, 0  ;;  %v204_v5 = vrot.slane %v2140_v57, 4 }
  0x83   :  { %v172_v60 = vpop.permute.xlu0 %171  ;;  %v357_v61 = vrot.slane %v1730_v58, 6  ;;  %v356_v1 = vrot.slane %v1729_v59, 6  ;;  %v158_v12 = vsel %vm2151_vm10, %v2163_v10, 0  ;;  %v2259_v59 = vsel %vm3105_vm11, %v203_v37, %v2126_v53 }
  0x84   :  { %v175_v62 = vrot.slane %v172_v60, 4  ;;  %vm2170_vm6 = vcmp.ne.s16.totalorder %v204_v5, 0  ;;  %v1733_v20 = vcombine.low %v158_v12, %v158_v12 }
  0x85   :  { %v2143_v0 = vpop.permute.xlu1 %232  ;;  %363 = vrot.lane.b32.xlu0 %v357_v61, %s1886_s28  ;;  %v214_v22 = vsel %vm2170_vm6, %v2163_v10, 0 }
  0x86   :  { %v2147_v3 = vsel %vm177_vm9, %v175_v62, %v172_v60  ;;  %v235_v14 = vrot.slane %v2143_v0, 4  ;;  %v360_v28 = vrot.slane %v1733_v20, 6  ;;  %v1743_v29 = vcombine.low %v214_v22, %v214_v22 }
  0x87   :  { %vm3066_vm3 = vcmp.ne.s16.totalorder %v2147_v3, 0  ;;  %v2157_v6 = vpop.permute.xlu0 %230 }
  0x88   :  { %v184_v7 = vsel %vm3066_vm3, %v2124_v52, 0  ;;  %vm2192_vm12 = vcmp.ne.s16.totalorder %v235_v14, 0  ;;  %v420_v38 = vrot.slane %v1743_v29, 2 }
  0x89   :  { %v174_v8 = vpop.permute.xlu1 %173  ;;  %361 = vrot.lane.b32.xlu0 %v356_v1, %s1886_s28  ;;  %v1735_v9 = vcombine.high %v184_v7, %v184_v7  ;;  %v1734_v16 = vcombine.low %v184_v7, %v184_v7  ;;  %v245_v32 = vsel %vm2192_vm12, %v2199_v25, 0  ;;  %v234_v1 = vrot.slane %v2157_v6, 4 }
  0x8a   :  { %v176_v11 = vrot.slane %v174_v8, 4  ;;  %v1752_v41 = vcombine.low %v245_v32, %v245_v32 }
  0x8b   :  { %390 = vrot.lane.b32.xlu1 %v1735_v9, %s1893_s12  ;;  %v2176_v15 = vpop.permute.xlu0 %286 }
  0x8c   :  { %vm2178_vm8 = vcmp.ne.s16.totalorder %v176_v11, 0  ;;  %v179_v42 = vsel %vm3100_vm7, %v175_v62, %v176_v11  ;;  %v473_v62 = vrot.slane %v1752_v41, 6  ;;  %v290_v22 = vrot.slane %v2176_v15, 4 }
  0x8d   :  { %v2182_v18 = vpop.permute.xlu1 %288  ;;  %v186_v19 = vsel %vm2178_vm8, %v2163_v10, 0  ;;  %v2262_v60 = vsel %vm177_vm9, %v179_v42, %v174_v8  ;;  %vm3072_vm9 = vcmp.ne.s16.totalorder %v2259_v59, 0 }
  0x8e   :  { %v1738_v21 = vcombine.low %v186_v19, %v186_v19  ;;  %v291_v33 = vrot.slane %v2182_v18, 4  ;;  %vm3093_vm5 = vcmp.ne.s16.totalorder %v2262_v60, 0  ;;  %v2285_v19 = vld [vmem:[#allocation2 + $0x8] sm:$0x33] }
  0x8f   :  { %388 = vrot.lane.b32.xlu1 %v1734_v16, %s1893_s12  ;;  %v2197_v24 = vpop.permute.xlu0 %258 }
  0x90   :  { %396 = vrot.lane.b32.xlu0 %v1738_v21, %s1893_s12  ;;  %v262_v26 = vrot.slane %v2197_v24, 4  ;;  %vm2239_vm4 = vcmp.ne.s16.totalorder %v291_v33, 0  ;;  %v212_v21 = vsel %vm3072_vm9, %v2124_v52, 0 }
  0x91   :  { %v2203_v27 = vpop.permute.xlu1 %260  ;;  %v301_v9 = vsel %vm2239_vm4, %v2199_v25, 0  ;;  %v1740_v32 = vcombine.high %v212_v21, %v212_v21 }
  0x92   :  { %v263_v30 = vrot.slane %v2203_v27, 4  ;;  %v2208_v31 = vsel %vm264_vm13, %v262_v26, %v2197_v24  ;;  %v1762_v16 = vcombine.low %v301_v9, %v301_v9 }
  0x93   :  { %3142 = vst [vmem:[#allocation3_spill] sm:$0xff] %v2208_v31  ;;  %369 = vrot.lane.b32.xlu1 %v360_v28, %s1886_s28  ;;  %v2215_v34 = vpop.permute.xlu0 %314  ;;  %vm3067_vm2 = vcmp.ne.s16.totalorder %v2208_v31, 0 }
  0x94   :  { %v318_v35 = vrot.slane %v2215_v34, 4  ;;  %vm2219_vm14 = vcmp.ne.s16.totalorder %v263_v30, 0  ;;  %v271_v49 = vsel %vm3067_vm2, %v2101_v43, 0  ;;  %vm3075_vm2 = vcmask 7168  }
  0x95   :  { %v2224_v39 = vpop.permute.xlu1 %316  ;;  %v273_v40 = vsel %vm2219_vm14, %v2199_v25, 0  ;;  %v1753_v7 = vcombine.low %v271_v49, %v271_v49  ;;  %v2281_v11 = vsel %vm3075_vm2, %v234_v1, %v2157_v6  ;;  %v1754_v12 = vcombine.high %v271_v49, %v271_v49 }
  0x96   :  { %v2234_v44 = vsel %vm3070_vm15, %v318_v35, %v2215_v34  ;;  %v319_v45 = vrot.slane %v2224_v39, 4  ;;  %v1757_v47 = vcombine.low %v273_v40, %v273_v40  ;;  %v185_v6 = vsel %vm3093_vm5, %v2285_v19, 0 }
  0x97   :  { %3145 = vst [vmem:[#allocation4_spill] sm:$0xff] %v2234_v44  ;;  %429 = vrot.lane.b32.xlu1 %v420_v38, %s1885_s0  ;;  %vm3069_vm0 = vcmp.ne.s16.totalorder %v2234_v44, 0  ;;  %vm3076_vm15 = vcmask 130048   ;;  %v266_v24 = vsel %vm3100_vm7, %v262_v26, %v263_v30  ;;  %v534_v28 = vrot.slane %v1762_v16, 2 }
  0x98   :  { %vm2250_vm3 = vcmp.ne.s16.totalorder %v319_v45, 0  ;;  %510 = vrot.lane.b32.xlu0 %v1757_v47, %s1894_s13  ;;  %v2276_v8 = vsel %vm3069_vm0, %v2101_v43, 0  ;;  %vm3071_vm0 = vcmp.ne.s16.totalorder %v2281_v11, 0  ;;  %v1736_v29 = vcombine.low %v185_v6, %v185_v6 }
  0x99   :  { %v2266_v61 = vsel %vm2250_vm3, %v1404_v56, 0  ;;  %v1763_v20 = vcombine.low %v2276_v8, %v2276_v8  ;;  %v243_v38 = vsel %vm3071_vm0, %v2101_v43, 0  ;;  %v2306_v40 = vsel %vm3076_vm15, %v290_v22, %v2176_v15  ;;  %v2318_v56 = vld [vmem:[#allocation2 + $0x14] sm:$0xf] }
  0x9a   :  { %3150 = vst [vmem:[#allocation5_spill] sm:$0xff] %v2266_v61  ;;  %3151 = vst [vmem:[#allocation6_spill] sm:$0xff] %v2306_v40  ;;  %v2311_v41 = vsel %vm264_vm13, %v266_v24, %v2203_v27  ;;  %v151_v26 = vsel %vm3100_vm7, %v147_v51, %v148_v63  ;;  %v1737_v30 = vcombine.high %v185_v6, %v185_v6  ;;  %v417_v47 = vrot.slane %v1740_v32, 2 }
  0x9b   :  { %482 = vrot.lane.b32.xlu1 %v473_v62, %s1895_s14  ;;  %3152 = vst [vmem:[#allocation7_spill] sm:$0xff] %v2311_v41  ;;  %v1748_v42 = vcombine.low %v243_v38, %v243_v38  ;;  %v1739_v49 = vcombine.low %v212_v21, %v212_v21  ;;  %vm3073_vm0 = vcmp.ne.s16.totalorder %v2306_v40, 0  ;;  %vm3074_vm9 = vcmp.ne.s16.totalorder %v2311_v41, 0 }
  0x9c   :  { %502 = vrot.lane.b32.xlu0 %v1753_v7, %s1894_s13  ;;  %v2326_v15 = vsel %vm2250_vm3, %v2318_v56, 0  ;;  %v2330_v50 = vsel %vm3095_vm1, %v151_v26, %v2135_v55  ;;  %v207_v51 = vsel %vm3100_vm7, %v203_v37, %v204_v5  ;;  %v272_v62 = vsel %vm3074_vm9, %v2108_v46, 0 }
  0x9d   :  { %3153 = vst [vmem:[#allocation8_spill] sm:$0xff] %v2326_v15  ;;  %v469_v63 = vrot.slane %v1748_v42, 6  ;;  %v416_v27 = vrot.slane %v1739_v49, 2  ;;  %v1749_v7 = vcombine.high %v243_v38, %v243_v38  ;;  %v299_v55 = vsel %vm3073_vm0, %v2101_v43, 0 }
  0x9e   :  { %vm3094_vm13 = vcmp.ne.s16.totalorder %v2330_v50, 0  ;;  %v2348_v53 = vsel %vm3105_vm11, %v207_v51, %v2140_v57  ;;  %v238_v5 = vsel %vm3100_vm7, %v234_v1, %v235_v14  ;;  %v1756_v37 = vcombine.high %v272_v62, %v272_v62 }
  0x9f   :  { %504 = vrot.lane.b32.xlu1 %v1754_v12, %s1894_s13  ;;  %v1758_v9 = vcombine.low %v299_v55, %v299_v55  ;;  %v157_v43 = vsel %vm3094_vm13, %v2285_v19, 0  ;;  %v470_v12 = vrot.slane %v1749_v7, 6  ;;  %vm3088_vm0 = vcmp.ne.s16.totalorder %v2348_v53, 0 }
  0xa0   :  { %563 = vrot.lane.b32.xlu0 %v1763_v20, %s1896_s15  ;;  %v2362_v57 = vsel %vm3075_vm2, %v238_v5, %v2143_v0  ;;  %v294_v14 = vsel %vm3100_vm7, %v290_v22, %v291_v33  ;;  %v1731_v16 = vcombine.low %v157_v43, %v157_v43  ;;  %v213_v20 = vsel %vm3088_vm0, %v2285_v19, 0 }
  0xa1   :  { %v530_v1 = vrot.slane %v1758_v9, 2  ;;  %v1755_v21 = vcombine.low %v272_v62, %v272_v62  ;;  %v1759_v6 = vcombine.high %v299_v55, %v299_v55  ;;  %vm3087_vm9 = vcmp.ne.s16.totalorder %v2362_v57, 0  ;;  %v115_v9 = vpop.permute.xlu0 %114 }
  0xa2   :  { %v2374_v0 = vsel %vm3076_vm15, %v294_v14, %v2182_v18  ;;  %v358_v24 = vrot.slane %v1731_v16, 6  ;;  %v1741_v33 = vcombine.low %v213_v20, %v213_v20  ;;  %v1742_v26 = vcombine.high %v213_v20, %v213_v20 }
  0xa3   :  { %543 = vrot.lane.b32.xlu1 %v534_v28, %s1897_s16  ;;  %3154 = vst [vmem:[#allocation9_spill] sm:$0xff] %v2374_v0  ;;  %v531_v22 = vrot.slane %v1759_v6, 2  ;;  %v1732_v28 = vcombine.high %v157_v43, %v157_v43  ;;  %vm3077_vm2 = vcmp.ne.s16.totalorder %v2374_v0, 0  ;;  %v322_v42 = vsel %vm3100_vm7, %v318_v35, %v319_v45  ;;  %v117_v43 = vpop.permute.xlu1 %116 }
  0xa4   :  { %392 = vrot.lane.b32.xlu0 %v1736_v29, %s1893_s12  ;;  %v244_v29 = vsel %vm3087_vm9, %v2108_v46, 0  ;;  %v418_v32 = vrot.slane %v1741_v33, 2  ;;  %v419_v51 = vrot.slane %v1742_v26, 2  ;;  %vm3155_vm15 = vcmask 138240  }
  0xa5   :  { %v1750_v38 = vcombine.low %v244_v29, %v244_v29  ;;  %v359_v18 = vrot.slane %v1732_v28, 6  ;;  %v1764_v34 = vcombine.high %v2276_v8, %v2276_v8  ;;  %vm578_vm0 = vcmask 1041408  }
  0xa6   :  { %vm3101_vm5 = vcmask 1045504   ;;  %vm398_vm13 = vcmask 1031168   ;;  %vm3102_vm1 = vcmask 900096  }
  0xa7   :  { %394 = vrot.lane.b32.xlu1 %v1737_v30, %s1893_s12  ;;  %v300_v30 = vsel %vm3077_vm2, %v2108_v46, 0 }
  0xa8   :  { %423 = vrot.lane.b32.xlu0 %v417_v47, %s1885_s0  ;;  %v471_v47 = vrot.slane %v1750_v38, 6  ;;  %v1760_v49 = vcombine.low %v300_v30, %v300_v30  ;;  %v1761_v55 = vcombine.high %v300_v30, %v300_v30 }
  0xaa   :  { %v532_v62 = vrot.slane %v1760_v49, 2  ;;  %v533_v35 = vrot.slane %v1761_v55, 2 }
  0xab   :  { %474 = vrot.lane.b32.xlu1 %v469_v63, %s1895_s14  ;;  %v1751_v63 = vcombine.high %v244_v29, %v244_v29 }
  0xac   :  { %421 = vrot.lane.b32.xlu0 %v416_v27, %s1885_s0  ;;  %v2396_v27 = vsel %vm3155_vm15, %v322_v42, %v2224_v39  ;;  %vm3099_vm15 = vcmask 908288  }
  0xad   :  { %3156 = vst [vmem:[#allocation10_spill] sm:$0xff] %v2396_v27  ;;  %v472_v7 = vrot.slane %v1751_v63, 6  ;;  %vm3082_vm2 = vcmp.ne.s16.totalorder %v2396_v27, 0 }
  0xae   :  { %v328_v39 = vsel %vm3082_vm2, %v2108_v46, 0  ;;  %v2415_v46 = vpop.permute.xlu0 %447  ;;  %vm3096_vm2 = vcmask 769024  }
  0xaf   :  { %508 = vrot.lane.b32.xlu1 %v1756_v37, %s1894_s13  ;;  %v1766_v45 = vcombine.high %v328_v39, %v328_v39  ;;  %v1765_v5 = vcombine.low %v328_v39, %v328_v39  ;;  %v329_v37 = vsel %vm2250_vm3, %v2199_v25, 0  ;;  %v119_v39 = vrot.slane %v117_v43, 4 }
  0xb0   :  { %476 = vrot.lane.b32.xlu0 %v470_v12, %s1895_s14  ;;  %v1767_v8 = vcombine.low %v329_v37, %v329_v37  ;;  %v446_v12 = vpop.permute.xlu1 %445  ;;  %v3157_v37 = vmov 0 }
  0xb1   :  { %vm2460_vm3 = vcmp.ne.s16.totalorder %v119_v39, 0 }
  0xb2   :  { %v2417_v14 = vpop.permute.xlu0 %451  ;;  %v3158_v37 = vsel %vm2460_vm3, 4294967295, %v3157_v37  ;;  %v130_v2 = vsel %vm2460_vm3, %v2163_v10, 0 }
  0xb3   :  { %535 = vrot.lane.b32.xlu1 %v530_v1, %s1897_s16  ;;  %3159 = vst [vmem:[#allocation11_spill] sm:$0xff] %v3158_v37  ;;  %v1728_v0 = vcombine.low %v130_v2, %v130_v2 }
  0xb4   :  { %506 = vrot.lane.b32.xlu0 %v1755_v21, %s1894_s13  ;;  %v2419_v1 = vpop.permute.xlu1 %449 }
  0xb7   :  { %365 = vrot.lane.b32.xlu1 %v358_v24, %s1886_s28 }
  0xb8   :  { %537 = vrot.lane.b32.xlu0 %v531_v22, %s1897_s16 }
  0xbb   :  { %425 = vrot.lane.b32.xlu1 %v418_v32, %s1885_s0 }
  0xbc   :  { %367 = vrot.lane.b32.xlu0 %v359_v18, %s1886_s28 }
  0xbf   :  { %478 = vrot.lane.b32.xlu1 %v471_v47, %s1895_s14 }
  0xc0   :  { %427 = vrot.lane.b32.xlu0 %v419_v51, %s1885_s0 }
  0xc3   :  { %539 = vrot.lane.b32.xlu1 %v532_v62, %s1897_s16 }
  0xc4   :  { %480 = vrot.lane.b32.xlu0 %v472_v7, %s1895_s14 }
  0xc7   :  { %565 = vrot.lane.b32.xlu1 %v1764_v34, %s1896_s15 }
  0xc8   :  { %541 = vrot.lane.b32.xlu0 %v533_v35, %s1897_s16 }
  0xcb   :  { %569 = vrot.lane.b32.xlu1 %v1766_v45, %s1896_s15 }
  0xcc   :  { %567 = vrot.lane.b32.xlu0 %v1765_v5, %s1896_s15  ;;  %v118_v5 = vrot.slane %v115_v9, 4 }
  0xce   :  { %v2472_v15 = vsel %vm3099_vm15, %v118_v5, %v115_v9  ;;  %v123_v44 = vsel %vm3100_vm7, %v118_v5, %v119_v39  ;;  %v453_v39 = vsel %vm3099_vm15, %v446_v12, %v2415_v46 }
  0xcf   :  { %3160 = vst [vmem:[#allocation12_spill] sm:$0xff] %v2472_v15  ;;  %vm3098_vm9 = vcmp.ne.s16.totalorder %v2472_v15, 0  ;;  %v2484_v9 = vsel %vm3099_vm15, %v123_v44, %v117_v43  ;;  %vm3106_vm15 = vcmask 785408  }
  0xd0   :  { %571 = vrot.lane.b32.xlu0 %v1767_v8, %s1896_s15  ;;  %v128_v2 = vsel %vm3098_vm9, %v2124_v52, 0  ;;  %vm3161_vm9 = vcmask 769024  }
  0xd1   :  { %v1724_v5 = vcombine.low %v128_v2, %v128_v2 }
  0xf7   :  { %v2421_v16 = vpop.permute.xlu0 %363 }
  0xfb   :  { %v362_v25 = vpop.permute.xlu0 %361 }
  0xfc   :  { %v371_v44 = vsel %vm3105_vm11, %v362_v25, %v2421_v16 }
  0xfd   :  { %v2423_v20 = vpop.permute.xlu1 %390 }
 0x101   :  { %v389_v58 = vpop.permute.xlu1 %388 }
 0x102   :  { %v2427_v6 = vpop.permute.xlu0 %396 }
 0x105   :  { %v2425_v21 = vpop.permute.xlu1 %369 }
 0x106   :  { %v593_v41 = vsel %vm578_vm0, %v1728_v0, %v2425_v21 }
 0x107   :  { %v604_v0 = vsel %vm3100_vm7, %v593_v41, %v2427_v6  ;;  %vm3162_vm7 = vcmask 916480  }
 0x109   :  { %v2429_v24 = vpop.permute.xlu1 %429 }
 0x10a   :  { %v2431_v33 = vpop.permute.xlu0 %510  ;;  %v615_v52 = vsel %vm3101_vm5, %v604_v0, %v2429_v24  ;;  %vm545_vm5 = vcmask 777216   ;;  %v1725_v0 = vcombine.high %v128_v2, %v128_v2 }
 0x10d   :  { %v2433_v22 = vpop.permute.xlu1 %482 }
 0x10e   :  { %v2435_v28 = vpop.permute.xlu0 %502 }
 0x111   :  { %v2437_v29 = vpop.permute.xlu1 %504 }
 0x112   :  { %v564_v32 = vpop.permute.xlu0 %563 }
 0x113   :  { %698 = vrot.lane.b32.xlu1 %v564_v32, %s1891_s10 }
 0x115   :  { %v2440_v38 = vpop.permute.xlu1 %543 }
 0x116   :  { %v2442_v18 = vpop.permute.xlu0 %392 }
 0x119   :  { %v2444_v26 = vpop.permute.xlu1 %394 }
 0x11a   :  { %v2446_v30 = vpop.permute.xlu0 %423 }
 0x11d   :  { %v475_v42 = vpop.permute.xlu1 %474 }
 0x11e   :  { %v422_v47 = vpop.permute.xlu0 %421  ;;  %v618_v43 = vsel %vm578_vm0, %v446_v12, %v475_v42 }
 0x11f   :  { %v431_v12 = vsel %vm3162_vm7, %v422_v47, %v2446_v30 }
 0x121   :  { %v2448_v49 = vpop.permute.xlu1 %508 }
 0x122   :  { %v2450_v51 = vpop.permute.xlu0 %476 }
 0x123   :  { %v485_v15 = vsel %vm3102_vm1, %v475_v42, %v2450_v51  ;;  %v581_v42 = vsel %vm578_vm0, %v1724_v5, %v371_v44  ;;  %vm3163_vm1 = vcmask 1043456  }
 0x124   :  { %vm3165_vm7 = vmmov %vm3163_vm1 }
 0x125   :  { %v536_v63 = vpop.permute.xlu1 %535 }
 0x126   :  { %v2452_v62 = vpop.permute.xlu0 %506 }
 0x129   :  { %v366_v7 = vpop.permute.xlu1 %365 }
 0x12a   :  { %v2454_v55 = vpop.permute.xlu0 %537  ;;  %v372_v25 = vsel %vm3105_vm11, %v2421_v16, %v366_v7 }
 0x12b   :  { %v584_v16 = vsel %vm578_vm0, %v1725_v0, %v372_v25  ;;  %v546_v2 = vsel %vm545_vm5, %v536_v63, %v2454_v55 }
 0x12d   :  { %v2456_v34 = vpop.permute.xlu1 %425 }
 0x12e   :  { %v368_v35 = vpop.permute.xlu0 %367 }
 0x131   :  { %v2458_v45 = vpop.permute.xlu1 %478 }
 0x132   :  { %v2464_v8 = vpop.permute.xlu0 %427 }
 0x135   :  { %v2469_v61 = vpop.permute.xlu1 %539 }
 0x136   :  { %v2474_v27 = vpop.permute.xlu0 %480 }
 0x139   :  { %v566_v40 = vpop.permute.xlu1 %565 }
 0x13a   :  { %v2480_v37 = vpop.permute.xlu0 %541  ;;  %v574_v10 = vsel %vm3096_vm2, %v564_v32, %v566_v40  ;;  %vm3104_vm2 = vcmp.ne.s16.totalorder %v2484_v9, 0 }
 0x13b   :  { %700 = vrot.lane.b32.xlu0 %v574_v10, %s1891_s10  ;;  %v399_v10 = vsel %vm398_vm13, %v389_v58, %v2423_v20  ;;  %v129_v58 = vsel %vm3104_vm2, %v2285_v19, 0 }
 0x13c   :  { %v596_v31 = vsel %vm3165_vm7, %v581_v42, %v399_v10  ;;  %v1726_v44 = vcombine.low %v129_v58, %v129_v58 }
 0x13e   :  { %v2498_v32 = vpop.permute.xlu0 %567 }
 0x13f   :  { %686 = vrot.lane.b32.xlu0 %v615_v52, %s1891_s10  ;;  %v575_v41 = vsel %vm3161_vm9, %v566_v40, %v2498_v32  ;;  %v632_v40 = vsel %vm3163_vm1, %v618_v43, %v2435_v28  ;;  %v621_v52 = vsel %vm578_vm0, %v453_v39, %v485_v15  ;;  %vm3164_vm9 = vcmask 1045504  }
 0x140   :  { %702 = vrot.lane.b32.xlu1 %v575_v41, %s1891_s10  ;;  %v642_v47 = vsel %vm3164_vm9, %v632_v40, %v536_v63  ;;  %v373_v41 = vsel %vm3105_vm11, %v366_v7, %v368_v35  ;;  %vm3166_vm2 = vmmov %vm3164_vm9  ;;  %v513_v15 = vsel %vm3106_vm15, %v2435_v28, %v2437_v29  ;;  %vm3167_vm1 = vcmask 916480  }
 0x141   :  { %v607_v19 = vsel %vm3166_vm2, %v596_v31, %v431_v12  ;;  %v432_v39 = vsel %vm3167_vm1, %v2446_v30, %v2456_v34  ;;  %v374_v43 = vsel %vm3105_vm11, %v368_v35, %v2425_v21  ;;  %v1727_v63 = vcombine.high %v129_v58, %v129_v58  ;;  %vm3168_vm2 = vmmov %vm3165_vm7 }
 0x142   :  { %v400_v7 = vsel %vm398_vm13, %v2423_v20, %v2442_v18  ;;  %v634_v31 = vsel %vm3168_vm2, %v621_v52, %v513_v15  ;;  %v587_v5 = vsel %vm578_vm0, %v1726_v44, %v373_v41  ;;  %vm3169_vm7 = vmmov %vm3168_vm2  ;;  %v433_v21 = vsel %vm3167_vm1, %v2456_v34, %v2464_v8 }
 0x143   :  { %688 = vrot.lane.b32.xlu0 %v642_v47, %s1891_s10  ;;  %v644_v28 = vsel %vm3164_vm9, %v634_v31, %v546_v2  ;;  %v598_v10 = vsel %vm3169_vm7, %v584_v16, %v400_v7  ;;  %v590_v30 = vsel %vm578_vm0, %v1727_v63, %v374_v43  ;;  %vm3170_vm11 = vcmask 900096   ;;  %vm3171_vm15 = vmmov %vm3164_vm9 }
 0x144   :  { %678 = vrot.lane.b32.xlu1 %v607_v19, %s1891_s10  ;;  %v487_v35 = vsel %vm3170_vm11, %v2458_v45, %v2474_v27  ;;  %v609_v20 = vsel %vm3171_vm15, %v598_v10, %v432_v39  ;;  %v401_v12 = vsel %vm398_vm13, %v2442_v18, %v2444_v26  ;;  %vm3172_vm2 = vmmov %vm3170_vm11  ;;  %vm3174_vm11 = vcmask 908288   ;;  %v572_v19 = vpop.permute.xlu0 %571 }
 0x145   :  { %v486_v25 = vsel %vm3172_vm2, %v2450_v51, %v2458_v45  ;;  %vm3173_vm9 = vmmov %vm3167_vm1  ;;  %v455_v0 = vsel %vm3174_vm11, %v2419_v1, %v2417_v14  ;;  %v402_v58 = vsel %vm398_vm13, %v2444_v26, %v2427_v6  ;;  %vm3177_vm1 = vcmask 1045504  }
 0x146   :  { %v434_v34 = vsel %vm3173_vm9, %v2464_v8, %v2429_v24  ;;  %vm3175_vm15 = vmmov %vm3169_vm7  ;;  %v627_v45 = vsel %vm578_vm0, %v455_v0, %v487_v35  ;;  %v548_v40 = vsel %vm545_vm5, %v2469_v61, %v2480_v37  ;;  %v879_v15 = vsel %vm2239_vm4, %v2318_v56, 0 }
 0x147   :  { %690 = vrot.lane.b32.xlu0 %v644_v28, %s1891_s10  ;;  %v600_v18 = vsel %vm3175_vm15, %v587_v5, %v401_v12  ;;  %vm3176_vm7 = vmmov %vm3174_vm11  ;;  %vm3180_vm11 = vcmask 785408   ;;  %v1813_v36 = vcombine.low %v879_v15, %v879_v15 }
 0x148   :  { %680 = vrot.lane.b32.xlu1 %v609_v20, %s1891_s10  ;;  %v454_v51 = vsel %vm3176_vm7, %v2415_v46, %v2419_v1  ;;  %v611_v24 = vsel %vm3177_vm1, %v600_v18, %v433_v21  ;;  %vm3178_vm2 = vmmov %vm3175_vm15  ;;  %v515_v46 = vsel %vm3180_vm11, %v2452_v62, %v2448_v49  ;;  %v547_v1 = vsel %vm545_vm5, %v2454_v55, %v2469_v61  ;;  %v570_v61 = vpop.permute.xlu1 %569 }
 0x149   :  { %v602_v8 = vsel %vm3178_vm2, %v590_v30, %v402_v58  ;;  %v624_v42 = vsel %vm578_vm0, %v454_v51, %v486_v25  ;;  %vm3179_vm9 = vmmov %vm3177_vm1  ;;  %vm3181_vm15 = vcmask 900096  }
 0x14a   :  { %v613_v6 = vsel %vm3179_vm9, %v602_v8, %v434_v34  ;;  %v488_v26 = vsel %vm3181_vm15, %v2474_v27, %v2433_v22  ;;  %vm3182_vm7 = vmmov %vm3180_vm11  ;;  %v549_v22 = vsel %vm545_vm5, %v2480_v37, %v2440_v38  ;;  %v651_v38 = vld [vmem:[%s3056_s2] sm:$0xff]  ;;  %v873_v37 = vsel %vm2192_vm12, %v2318_v56, 0 }
 0x14b   :  { %682 = vrot.lane.b32.xlu0 %v611_v24, %s1891_s10  ;;  %v514_v52 = vsel %vm3182_vm7, %v2437_v29, %v2452_v62  ;;  %vm3183_vm1 = vmmov %vm3178_vm2  ;;  %v630_v41 = vsel %vm578_vm0, %v2417_v14, %v488_v26  ;;  %v1803_v44 = vcombine.low %v873_v37, %v873_v37 }
 0x14c   :  { %684 = vrot.lane.b32.xlu1 %v613_v6, %s1891_s10  ;;  %v638_v47 = vsel %vm3183_vm1, %v627_v45, %v515_v46  ;;  %vm3184_vm2 = vmmov %vm3179_vm9  ;;  %v1876_v6 = vld [vmem:[%s3055_s1] sm:$0xff]  }
 0x14d   :  { %v648_v16 = vsel %vm3184_vm2, %v638_v47, %v548_v40  ;;  %vm3185_vm9 = vmmov %vm3183_vm1  ;;  %v3201_v47 = vmov 0  }
 0x14e   :  { %v636_v2 = vsel %vm3185_vm9, %v624_v42, %v514_v52  ;;  %vm3186_vm11 = vmmov %vm3184_vm2 }
 0x14f   :  { %694 = vrot.lane.b32.xlu0 %v648_v16, %s1891_s10  ;;  %v646_v27 = vsel %vm3186_vm11, %v636_v2, %v547_v1  ;;  %vm3187_vm15 = vmmov %vm3182_vm7  ;;  %vm3188_vm7 = vcmask 769024  }
 0x150   :  { %692 = vrot.lane.b32.xlu1 %v646_v27, %s1891_s10  ;;  %v516_v29 = vsel %vm3187_vm15, %v2448_v49, %v2431_v33  ;;  %v576_v62 = vsel %vm3188_vm7, %v2498_v32, %v570_v61  ;;  %v876_v33 = vsel %vm2219_vm14, %v2318_v56, 0  ;;  %vm3189_vm9 = vmmov %vm3188_vm7  ;;  %vm3190_vm14 = vcmask 138240  }
 0x151   :  { %v640_v14 = vsel %vm3183_vm1, %v630_v41, %v516_v29  ;;  %v577_v49 = vsel %vm3189_vm9, %v570_v61, %v572_v19  ;;  %v1808_v32 = vcombine.low %v876_v33, %v876_v33  ;;  %vm3191_vm11 = vmmov %vm3190_vm14 }
 0x152   :  { %v650_v55 = vsel %vm3184_vm2, %v640_v14, %v549_v22  ;;  %vm3192_vm15 = vmmov %vm3191_vm11 }
 0x153   :  { %704 = vrot.lane.b32.xlu0 %v576_v62, %s1891_s10  ;;  %vm3193_vm7 = vmmov %vm3191_vm11 }
 0x154   :  { %696 = vrot.lane.b32.xlu1 %v650_v55, %s1891_s10  ;;  %vm3194_vm1 = vmmov %vm3193_vm7 }
 0x155   :  { %vm3195_vm2 = vmmov %vm3194_vm1 }
 0x156   :  { %vm3196_vm9 = vmmov %vm3194_vm1 }
 0x157   :  { %655 = vperm.xlu0 %1870, %v651_v38  }
 0x158   :  { %706 = vrot.lane.b32.xlu1 %v577_v49, %s1891_s10 }
 0x15b   :  { %1046 = vrot.lane.b32.xlu0 %v1808_v32, %s1894_s13 }
 0x15c   :  { %1019 = vrot.lane.b32.xlu1 %v1803_v44, %s1895_s14 }
 0x160   :  { %1073 = vrot.lane.b32.xlu1 %v1813_v36, %s1897_s16 }
 0x185   :  { %v699_v43 = vpop.permute.xlu1 %698 }
 0x1ad   :  { %v701_v39 = vpop.permute.xlu0 %700 }
 0x1b1   :  { %v687_v63 = vpop.permute.xlu0 %686 }
 0x1b2   :  { %v703_v7 = vpop.permute.xlu1 %702 }
 0x1b3   :  { %v717_v18 = vsel %vm3196_vm9, %v701_v39, %v703_v7  ;;  %vm3203_vm9 = vcmp.ne.s16.totalorder %v2330_v50, 0 }
 0x1b5   :  { %v689_v31 = vpop.permute.xlu0 %688 }
 0x1b6   :  { %v679_v5 = vpop.permute.xlu1 %678 }
 0x1b9   :  { %v691_v28 = vpop.permute.xlu0 %690 }
 0x1ba   :  { %v681_v10 = vpop.permute.xlu1 %680  ;;  %v712_v58 = vsel %vm3195_vm2, %v689_v31, %v691_v28 }
 0x1bb   :  { %v708_v56 = vsel %vm3191_vm11, %v679_v5, %v681_v10  ;;  %vm3198_vm11 = vmmov %vm3194_vm1 }
 0x1bd   :  { %v683_v30 = vpop.permute.xlu0 %682 }
 0x1be   :  { %v685_v21 = vpop.permute.xlu1 %684  ;;  %v709_v35 = vsel %vm3190_vm14, %v681_v10, %v683_v30  ;;  %vm3197_vm14 = vmmov %vm3194_vm1 }
 0x1bf   :  { %744 = vmatprep.subr.bf16.mxu0 %v709_v35  ;;  %v711_v20 = vsel %vm3192_vm15, %v685_v21, %v687_v63  ;;  %v710_v12 = vsel %vm3193_vm7, %v683_v30, %v685_v21  ;;  %v716_v51 = vsel %vm3197_vm14, %v699_v43, %v701_v39  ;;  %vm3199_vm15 = vmmov %vm3194_vm1  ;;  %vm3204_vm14 = vcmp.ne.s16.totalorder %v2262_v60, 0 }
 0x1c0   :  { %745 = vmatpush1.bf16.msra.mxu0 %v708_v56  ;;  %787 = vmatprep.subr.bf16.mxu1 %v711_v20  ;;  %v733_v42 = vsel %vm578_vm0, %v716_v51, 0  ;;  %vm3200_vm7 = vmmov %vm3194_vm1 }
 0x1c1   :  { %v695_v25 = vpop.permute.xlu0 %694  ;;  %788 = vmatpush1.bf16.msra.mxu1 %v710_v12 }
 0x1c2   :  { %v693_v34 = vpop.permute.xlu1 %692 }
 0x1c3   :  { %v713_v0 = vsel %vm3194_vm1, %v691_v28, %v693_v34  ;;  %v714_v40 = vsel %vm3199_vm15, %v693_v34, %v695_v25  ;;  %vm728_vm1 = vcmask 293888   ;;  %vm3207_vm15 = vcmp.ne.s16.totalorder %v2259_v59, 0 }
 0x1c4   :  { %746 = vmatprep.subr.bf16.mxu0 %v713_v0 }
 0x1c5   :  { %747 = vmatpush1.bf16.msra.mxu0 %v712_v58  ;;  %v705_v45 = vpop.permute.xlu0 %704 }
 0x1c6   :  { %1769 = vmatprep.subr.msk.bf16.mxu0 %vm578_vm0, %v717_v18  ;;  %v697_v24 = vpop.permute.xlu1 %696  ;;  %v718_v46 = vsel %vm3200_vm7, %v703_v7, %v705_v45 }
 0x1c7   :  { %v715_v8 = vsel %vm3198_vm11, %v695_v25, %v697_v24  ;;  %v739_v52 = vsel %vm578_vm0, %v718_v46, 0  ;;  %vm3205_vm11 = vcmp.ne.s16.totalorder %v2147_v3, 0 }
 0x1c8   :  { %789 = vmatprep.subr.bf16.mxu1 %v715_v8 }
 0x1c9   :  { %749 = vmatpush1.bf16.msra.mxu0 %v733_v42  ;;  %790 = vmatpush1.bf16.msra.mxu1 %v714_v40 }
 0x1ca   :  { %v707_v1 = vpop.permute.xlu1 %706 }
 0x1cb   :  { %v719_v26 = vsel %vm3195_vm2, %v705_v45, %v707_v1 }
 0x1cc   :  { %1770 = vmatmul.mubr.msk.bf16.vlgmr.msra.gmra.mrb[0].mxu0 %vm728_vm1, %v1876_v6  ;;  %1771 = vmatprep.subr.msk.bf16.mxu1 %vm578_vm0, %v719_v26  ;;  %vm3202_vm0 = vcmp.ne.s16.totalorder %v2132_v54, 0  ;;  %v3210_v26 = vld [vmem:[#allocation3_spill] sm:$0xff] }
 0x1cd   :  { %792 = vmatpush1.bf16.msra.mxu1 %v739_v52  ;;  %1326 = vmatprep.mubr.bf16.mxu0 %v3201_v47  ;;  %vm3211_vm7 = vcmp.ne.s16.totalorder %v3210_v26, 0 }
 0x1d0   :  { %1772 = vmatmul.mubr.msk.bf16.vlgmr.msra.gmra.mrb[0].mxu1 %vm728_vm1, %v1876_v6 }
 0x1d1   :  { %1367 = vmatprep.mubr.bf16.mxu1 %v3201_v47 }
 0x1d6   :  { %v656_v16 = vpop.permute.xlu0 %655 }
 0x29f   :  { %v778_v2 = vpop.f32.mrb[0].mxu0 }
 0x2a0   :  { %v779_v41 = vadd.f32 %v778_v2, %v656_v16  ;;  %v780_v61 = vpop.f32.mrb[1].mxu0 }
 0x2a1   :  { %v781_v27 = vadd.f32 %v780_v61, %v656_v16  ;;  %v2654_v22 = vpop.f32.mrb[2].mxu0 }
 0x2a2   :  { %v830_v29 = vmax.f32 %v779_v41, 0.0  ;;  %v2656_v62 = vpop.f32.mrb[3].mxu0  ;;  %v3212_v41 = vld [vmem:[#allocation7_spill] sm:$0xff] }
 0x2a3   :  { %v831_v14 = vmax.f32 %v781_v27, 0.0  ;;  %v821_v55 = vpop.f32.mrb[0].mxu1  ;;  %vm3213_vm1 = vcmp.ne.s16.totalorder %v3212_v41, 0 }
 0x2a4   :  { %v822_v19 = vadd.f32 %v821_v55, %v656_v16  ;;  %v823_v38 = vpop.f32.mrb[1].mxu1  ;;  %v1880_v39 = vpack.c.bf16 %v830_v29, %v830_v29 }
 0x2a5   :  { %v2658_v33 = vpack.c.bf16 %v831_v14, %v830_v29  ;;  %v824_v49 = vadd.f32 %v823_v38, %v656_v16  ;;  %v2660_v37 = vpop.f32.mrb[2].mxu1  ;;  %v1879_v36 = vpack.c.bf16 %v831_v14, %v831_v14  ;;  %v3214_v14 = vld [vmem:[#allocation6_spill] sm:$0xff] }
 0x2a6   :  { %v832_v32 = vmax.f32 %v822_v19, 0.0  ;;  %v2662_v44 = vpop.f32.mrb[3].mxu1  ;;  %987 = vrot.lane.b32.xlu1 %v1880_v39, %s1892_s11  ;;  %vm3215_vm2 = vcmp.ne.s16.totalorder %v3214_v14, 0  ;;  %v3218_v39 = vld [vmem:[#allocation4_spill] sm:$0xff] }
 0x2a7   :  { %850 = vst [vmem:[#allocation2 + $0x4] sm:$0xff] %v2658_v33  ;;  %v833_v15 = vmax.f32 %v824_v49, 0.0  ;;  %989 = vrot.lane.b32.xlu0 %v1879_v36, %s1892_s11  ;;  %v874_v52 = vsel %vm3211_vm7, %v2658_v33, 0  ;;  %v877_v55 = vsel %vm3215_vm2, %v2658_v33, 0  ;;  %v3216_v49 = vld [vmem:[#allocation9_spill] sm:$0xff]  ;;  %vm3232_vm2 = vcmask 785408  }
 0x2a8   :  { %v1882_v7 = vpack.c.bf16 %v832_v32, %v832_v32  ;;  %v1804_v16 = vcombine.low %v874_v52, %v874_v52  ;;  %v1805_v2 = vcombine.high %v874_v52, %v874_v52  ;;  %v1810_v19 = vcombine.high %v877_v55, %v877_v55 }
 0x2a9   :  { %v2665_v43 = vpack.c.bf16 %v833_v15, %v832_v32  ;;  %v1881_v63 = vpack.c.bf16 %v833_v15, %v833_v15  ;;  %v1809_v38 = vcombine.low %v877_v55, %v877_v55 }
 0x2aa   :  { %991 = vrot.lane.b32.xlu1 %v1882_v7, %s1892_s11 }
 0x2ab   :  { %851 = vst [vmem:[#allocation2 + $0xc] sm:$0xff] %v2665_v43  ;;  %993 = vrot.lane.b32.xlu0 %v1881_v63, %s1892_s11  ;;  %v875_v61 = vsel %vm3213_vm1, %v2665_v43, 0  ;;  %vm3230_vm1 = vcmask 1043456  }
 0x2ac   :  { %v1806_v27 = vcombine.low %v875_v61, %v875_v61  ;;  %v1807_v29 = vcombine.high %v875_v61, %v875_v61 }
 0x2ae   :  { %v2672_v31 = vld [vmem:[#allocation2] sm:$0xff] }
 0x2af   :  { %v859_v5 = vsel %vm3202_vm0, %v2672_v31, 0  ;;  %v862_v50 = vsel %vm3205_vm11, %v2672_v31, 0  ;;  %v865_v18 = vsel %vm3207_vm15, %v2672_v31, 0  ;;  %vm3217_vm0 = vcmp.ne.s16.totalorder %v3216_v49, 0 }
 0x2b0   :  { %v1781_v28 = vcombine.high %v859_v5, %v859_v5  ;;  %v1780_v54 = vcombine.low %v859_v5, %v859_v5  ;;  %v1786_v34 = vcombine.high %v862_v50, %v862_v50  ;;  %v1791_v51 = vcombine.high %v865_v18, %v865_v18 }
 0x2b1   :  { %v1790_v59 = vcombine.low %v865_v18, %v865_v18  ;;  %v1785_v8 = vcombine.low %v862_v50, %v862_v50  ;;  %v878_v32 = vsel %vm3217_vm0, %v2665_v43, 0  ;;  %vm3223_vm11 = vcmask 908288   ;;  %vm3233_vm0 = vmmov %vm3230_vm1 }
 0x2b2   :  { %911 = vrot.lane.b32.xlu1 %v1781_v28, %s1886_s28  ;;  %v2678_v10 = vld [vmem:[#allocation2 + $0x8] sm:$0xff]  ;;  %v2680_v30 = vld [vmem:[#allocation2 + $0x10] sm:$0xf]  ;;  %v1812_v15 = vcombine.high %v878_v32, %v878_v32  ;;  %v1811_v36 = vcombine.low %v878_v32, %v878_v32 }
 0x2b3   :  { %v860_v21 = vsel %vm3203_vm9, %v2678_v10, 0  ;;  %v861_v20 = vsel %vm2151_vm10, %v2680_v30, 0  ;;  %v863_v25 = vsel %vm3204_vm14, %v2678_v10, 0  ;;  %v864_v0 = vsel %vm2178_vm8, %v2680_v30, 0  ;;  %v3220_v28 = vld [vmem:[#allocation10_spill] sm:$0xff] }
 0x2b4   :  { %v1783_v35 = vcombine.high %v860_v21, %v860_v21  ;;  %v1782_v56 = vcombine.low %v860_v21, %v860_v21  ;;  %v1784_v12 = vcombine.low %v861_v20, %v861_v20  ;;  %v1787_v4 = vcombine.low %v863_v25, %v863_v25 }
 0x2b5   :  { %v1789_v60 = vcombine.low %v864_v0, %v864_v0  ;;  %v1788_v58 = vcombine.high %v863_v25, %v863_v25  ;;  %vm3206_vm10 = vcmp.ne.s16.totalorder %v2348_v53, 0  ;;  %v867_v45 = vsel %vm2170_vm6, %v2680_v30, 0  ;;  %v1047_v25 = vpop.permute.xlu0 %1046 }
 0x2b6   :  { %915 = vrot.lane.b32.xlu0 %v1783_v35, %s1886_s28  ;;  %913 = vrot.lane.b32.xlu1 %v1782_v56, %s1886_s28  ;;  %v866_v3 = vsel %vm3206_vm10, %v2678_v10, 0  ;;  %v1794_v53 = vcombine.low %v867_v45, %v867_v45  ;;  %vm3208_vm8 = vcmp.ne.s16.totalorder %v2281_v11, 0  ;;  %vm3209_vm6 = vcmp.ne.s16.totalorder %v2362_v57, 0  ;;  %vm3224_vm10 = vmmov %vm3223_vm11 }
 0x2b7   :  { %v1792_v17 = vcombine.low %v866_v3, %v866_v3  ;;  %v1793_v24 = vcombine.high %v866_v3, %v866_v3  ;;  %v871_v42 = vsel %vm3208_vm8, %v2658_v33, 0  ;;  %v872_v6 = vsel %vm3209_vm6, %v2665_v43, 0  ;;  %vm3225_vm15 = vmmov %vm3224_vm10 }
 0x2b8   :  { %v1800_v13 = vcombine.high %v871_v42, %v871_v42  ;;  %v1799_v40 = vcombine.low %v871_v42, %v871_v42  ;;  %v1802_v46 = vcombine.high %v872_v6, %v872_v6  ;;  %v1801_v1 = vcombine.low %v872_v6, %v872_v6 }
 0x2b9   :  { %vm3219_vm9 = vcmp.ne.s16.totalorder %v3218_v39, 0  ;;  %vm3221_vm14 = vcmp.ne.s16.totalorder %v3220_v28, 0  ;;  %v858_v45 = vsel %vm2460_vm3, %v2680_v30, 0  ;;  %vm3227_vm8 = vcmask 1039360   ;;  %vm3231_vm3 = vmmov %vm3230_vm1 }
 0x2ba   :  { %909 = vrot.lane.b32.xlu0 %v1780_v54, %s1886_s28  ;;  %917 = vrot.lane.b32.xlu1 %v1784_v12, %s1886_s28  ;;  %v880_v63 = vsel %vm3219_vm9, %v2658_v33, 0  ;;  %v881_v21 = vsel %vm3221_vm14, %v2665_v43, 0  ;;  %v3222_v33 = vld [vmem:[#allocation8_spill] sm:$0xff]  ;;  %v2763_v54 = vpop.permute.xlu1 %1019  ;;  %vm3228_vm6 = vmmov %vm3227_vm8  ;;  %vm3234_vm9 = vcmp.ne.s16.totalorder %v2484_v9, 0  ;;  %vm3235_vm14 = vcmask 769024  }
 0x2bb   :  { %v1814_v7 = vcombine.low %v880_v63, %v880_v63  ;;  %v1815_v5 = vcombine.high %v880_v63, %v880_v63  ;;  %v1816_v35 = vcombine.low %v881_v21, %v881_v21  ;;  %v1817_v56 = vcombine.high %v881_v21, %v881_v21  ;;  %vm3229_vm7 = vmmov %vm3228_vm6 }
 0x2bc   :  { %v1818_v20 = vcombine.low %v3222_v33, %v3222_v33 }
 0x2be   :  { %940 = vrot.lane.b32.xlu0 %v1787_v4, %s1893_s12  ;;  %938 = vrot.lane.b32.xlu1 %v1786_v34, %s1893_s12  ;;  %v1074_v12 = vpop.permute.xlu1 %1073 }
 0x2c2   :  { %944 = vrot.lane.b32.xlu0 %v1789_v60, %s1893_s12  ;;  %942 = vrot.lane.b32.xlu1 %v1788_v58, %s1893_s12 }
 0x2c6   :  { %967 = vrot.lane.b32.xlu0 %v1792_v17, %s1885_s0  ;;  %965 = vrot.lane.b32.xlu1 %v1791_v51, %s1885_s0  ;;  %v857_v51 = vsel %vm3234_vm9, %v2678_v10, 0 }
 0x2ca   :  { %971 = vrot.lane.b32.xlu0 %v1794_v53, %s1885_s0  ;;  %969 = vrot.lane.b32.xlu1 %v1793_v24, %s1885_s0  ;;  %v1779_v24 = vcombine.low %v858_v45, %v858_v45 }
 0x2ce   :  { %963 = vrot.lane.b32.xlu0 %v1790_v59, %s1885_s0  ;;  %936 = vrot.lane.b32.xlu1 %v1785_v8, %s1893_s12 }
 0x2d2   :  { %1013 = vrot.lane.b32.xlu0 %v1800_v13, %s1895_s14  ;;  %1011 = vrot.lane.b32.xlu1 %v1799_v40, %s1895_s14 }
 0x2d6   :  { %1017 = vrot.lane.b32.xlu0 %v1802_v46, %s1895_s14  ;;  %1015 = vrot.lane.b32.xlu1 %v1801_v1, %s1895_s14 }
 0x2da   :  { %1038 = vrot.lane.b32.xlu0 %v1804_v16, %s1894_s13  ;;  %1040 = vrot.lane.b32.xlu1 %v1805_v2, %s1894_s13 }
 0x2de   :  { %1042 = vrot.lane.b32.xlu0 %v1806_v27, %s1894_s13  ;;  %1044 = vrot.lane.b32.xlu1 %v1807_v29, %s1894_s13 }
 0x2e2   :  { %1067 = vrot.lane.b32.xlu0 %v1810_v19, %s1897_s16  ;;  %1065 = vrot.lane.b32.xlu1 %v1809_v38, %s1897_s16 }
 0x2e6   :  { %1071 = vrot.lane.b32.xlu0 %v1812_v15, %s1897_s16  ;;  %1069 = vrot.lane.b32.xlu1 %v1811_v36, %s1897_s16 }
 0x2ea   :  { %1092 = vrot.lane.b32.xlu0 %v1814_v7, %s1896_s15  ;;  %1094 = vrot.lane.b32.xlu1 %v1815_v5, %s1896_s15 }
 0x2ee   :  { %1096 = vrot.lane.b32.xlu0 %v1816_v35, %s1896_s15  ;;  %1098 = vrot.lane.b32.xlu1 %v1817_v56, %s1896_s15 }
 0x2f2   :  { %1100 = vrot.lane.b32.xlu0 %v1818_v20, %s1896_s15 }
 0x318   :  { %v988_v50 = vpop.permute.xlu1 %987 }
 0x319   :  { %v990_v43 = vpop.permute.xlu0 %989 }
 0x31a   :  { %v2766_v4 = vsel %vm3223_vm11, %v988_v50, %v990_v43  ;;  %vm3236_vm11 = vmmov %vm3228_vm6 }
 0x31c   :  { %v992_v0 = vpop.permute.xlu1 %991 }
 0x31d   :  { %v2768_v34 = vpop.permute.xlu0 %993  ;;  %v2771_v60 = vsel %vm3224_vm10, %v990_v43, %v992_v0  ;;  %vm3237_vm10 = vmmov %vm3233_vm0 }
 0x31e   :  { %v2775_v58 = vsel %vm3225_vm15, %v992_v0, %v2768_v34  ;;  %vm3238_vm15 = vmmov %vm3233_vm0 }
 0x324   :  { %v912_v3 = vpop.permute.xlu1 %911 }
 0x328   :  { %v916_v18 = vpop.permute.xlu0 %915  ;;  %v914_v17 = vpop.permute.xlu1 %913 }
 0x329   :  { %v2781_v53 = vsel %vm3227_vm8, %v912_v3, %v914_v17  ;;  %vm3239_vm8 = vcmask 916480  }
 0x32c   :  { %v910_v59 = vpop.permute.xlu0 %909  ;;  %v918_v8 = vpop.permute.xlu1 %917 }
 0x32d   :  { %v2784_v42 = vsel %vm3228_vm6, %v910_v59, %v912_v3  ;;  %v2787_v13 = vsel %vm3229_vm7, %v916_v18, %v918_v8  ;;  %v1120_v40 = vsel %vm3230_vm1, %v1779_v24, %v918_v8  ;;  %v921_v24 = vsel %vm3236_vm11, %v914_v17, %v916_v18  ;;  %vm3240_vm6 = vmmov %vm3233_vm0 }
 0x32e   :  { %1200 = vrot.lane.b32.xlu0 %v1120_v40, %s1891_s10  ;;  %vm3241_vm7 = vmmov %vm3233_vm0 }
 0x32f   :  { %vm3242_vm1 = vmmov %vm3239_vm8 }
 0x330   :  { %v941_v6 = vpop.permute.xlu0 %940  ;;  %v939_v46 = vpop.permute.xlu1 %938  ;;  %vm3246_vm9 = vmmov %vm3242_vm1 }
 0x331   :  { %v947_v9 = vsel %vm398_vm13, %v939_v46, %v941_v6  ;;  %vm3248_vm11 = vmmov %vm3233_vm0 }
 0x334   :  { %v945_v1 = vpop.permute.xlu0 %944  ;;  %v943_v30 = vpop.permute.xlu1 %942 }
 0x335   :  { %v2792_v26 = vsel %vm398_vm13, %v941_v6, %v943_v30 }
 0x338   :  { %v2794_v52 = vpop.permute.xlu0 %967  ;;  %v966_v16 = vpop.permute.xlu1 %965 }
 0x339   :  { %v974_v8 = vsel %vm3239_vm8, %v966_v16, %v2794_v52 }
 0x33a   :  { %v1126_v17 = vsel %vm3241_vm7, %v947_v9, %v974_v8  ;;  %vm3254_vm7 = vmmov %vm3242_vm1 }
 0x33c   :  { %v972_v2 = vpop.permute.xlu0 %971  ;;  %v2796_v41 = vpop.permute.xlu1 %969 }
 0x33d   :  { %v976_v40 = vsel %vm3242_vm1, %v2796_v41, %v972_v2  ;;  %vm3255_vm1 = vmmov %vm3233_vm0 }
 0x340   :  { %v964_v61 = vpop.permute.xlu0 %963  ;;  %v937_v27 = vpop.permute.xlu1 %936 }
 0x344   :  { %v2798_v29 = vpop.permute.xlu0 %1013  ;;  %v2800_v55 = vpop.permute.xlu1 %1011 }
 0x345   :  { %v1138_v10 = vsel %vm3240_vm6, %v988_v50, %v2800_v55  ;;  %vm3253_vm6 = vmmov %vm3233_vm0 }
 0x348   :  { %v2802_v19 = vpop.permute.xlu0 %1017  ;;  %v2804_v38 = vpop.permute.xlu1 %1015 }
 0x34c   :  { %v1039_v32 = vpop.permute.xlu0 %1038  ;;  %v2806_v15 = vpop.permute.xlu1 %1040 }
 0x350   :  { %v2808_v36 = vpop.permute.xlu0 %1042  ;;  %v2810_v63 = vpop.permute.xlu1 %1044 }
 0x351   :  { %v1051_v33 = vsel %vm3232_vm2, %v2810_v63, %v1047_v25  ;;  %v1777_v25 = vcombine.low %v857_v51, %v857_v51  ;;  %vm3245_vm2 = vmmov %vm3235_vm14 }
 0x353   :  { %v1114_v59 = vsel %vm3238_vm15, %v1777_v25, %v921_v24  ;;  %vm3250_vm15 = vmmov %vm3233_vm0 }
 0x354   :  { %v2812_v7 = vpop.permute.xlu0 %1067  ;;  %v1066_v5 = vpop.permute.xlu1 %1065 }
 0x355   :  { %v1153_v21 = vsel %vm3231_vm3, %v1039_v32, %v1066_v5 }
 0x356   :  { %1222 = vrot.lane.b32.xlu0 %v1153_v21, %s1891_s10  ;;  %v3243_v21 = vld [vmem:[#allocation12_spill] sm:$0xff] }
 0x357   :  { %vm3244_vm3 = vcmp.ne.s16.totalorder %v3243_v21, 0 }
 0x358   :  { %v1072_v35 = vpop.permute.xlu0 %1071  ;;  %v2816_v56 = vpop.permute.xlu1 %1069 }
 0x359   :  { %v1078_v20 = vsel %vm545_vm5, %v1072_v35, %v1074_v12  ;;  %v1135_v12 = vsel %vm3237_vm10, %v945_v1, %v972_v2  ;;  %vm3249_vm10 = vcmask 900096  }
 0x35a   :  { %v2822_v43 = vsel %vm3233_vm0, %v1051_v33, %v1078_v20  ;;  %v856_v33 = vsel %vm3244_vm3, %v2672_v31, 0  ;;  %v949_v20 = vsel %vm398_vm13, %v943_v30, %v945_v1  ;;  %v1022_v1 = vsel %vm3249_vm10, %v2798_v29, %v2804_v38  ;;  %vm3252_vm8 = vmmov %vm3249_vm10 }
 0x35b   :  { %v1132_v50 = vsel %vm3233_vm0, %v949_v20, %v976_v40  ;;  %v1776_v24 = vcombine.high %v856_v33, %v856_v33  ;;  %v1778_v30 = vcombine.high %v857_v51, %v857_v51  ;;  %vm3256_vm3 = vcmask 785408   ;;  %v1878_v51 = vld [vmem:[#allocation2 + $0x14] sm:$0xf] }
 0x35c   :  { %v1093_v0 = vpop.permute.xlu0 %1092  ;;  %v1095_v3 = vpop.permute.xlu1 %1094  ;;  %v1413_v48 = vsel %vm2192_vm12, %v1878_v51, 0 }
 0x35d   :  { %1232 = vrot.lane.b32.xlu1 %v1093_v0, %s1891_s10  ;;  %v1102_v45 = vsel %vm3235_vm14, %v1093_v0, %v1095_v3  ;;  %v973_v0 = vsel %vm3246_vm9, %v964_v61, %v966_v16  ;;  %vm3247_vm14 = vmmov %vm3233_vm0  ;;  %v1775_v61 = vcombine.low %v856_v33, %v856_v33 }
 0x35e   :  { %1234 = vrot.lane.b32.xlu0 %v1102_v45, %s1891_s10  ;;  %v946_v45 = vsel %vm398_vm13, %v937_v27, %v939_v46  ;;  %v1111_v2 = vsel %vm3247_vm14, %v1776_v24, %v2781_v53  ;;  %v1117_v46 = vsel %vm3250_vm15, %v1778_v30, %v2787_v13  ;;  %vm3251_vm13 = vmmov %vm3233_vm0  ;;  %v1024_v53 = vsel %vm3252_vm8, %v2802_v19, %v2763_v54 }
 0x35f   :  { %v1123_v31 = vsel %vm3248_vm11, %v946_v45, %v973_v0  ;;  %v1144_v16 = vsel %vm3251_vm13, %v2771_v60, %v1022_v1  ;;  %v1108_v27 = vsel %vm3253_vm6, %v1775_v61, %v2784_v42  ;;  %v1150_v13 = vsel %vm3255_vm1, %v2768_v34, %v1024_v53  ;;  %vm3259_vm9 = vmmov %vm3255_vm1 }
 0x360   :  { %v1097_v18 = vpop.permute.xlu0 %1096  ;;  %v1075_v60 = vsel %vm545_vm5, %v1066_v5, %v2812_v7  ;;  %v1048_v54 = vsel %vm3256_vm3, %v1039_v32, %v2806_v15  ;;  %v1077_v34 = vsel %vm545_vm5, %v2816_v56, %v1072_v35  ;;  %vm3260_vm14 = vmmov %vm3256_vm3  ;;  %v1099_v5 = vpop.permute.xlu1 %1098 }
 0x361   :  { %1210 = vrot.lane.b32.xlu1 %v1135_v12, %s1891_s10  ;;  %v1103_v6 = vsel %vm3245_vm2, %v1095_v3, %v1097_v18  ;;  %v975_v3 = vsel %vm3254_vm7, %v2794_v52, %v2796_v41  ;;  %vm3257_vm2 = vmmov %vm3233_vm0  ;;  %v1156_v41 = vsel %vm3259_vm9, %v1048_v54, %v1075_v60  ;;  %v1050_v32 = vsel %vm3260_vm14, %v2808_v36, %v2810_v63 }
 0x362   :  { %1196 = vrot.lane.b32.xlu0 %v1114_v59, %s1891_s10  ;;  %v1129_v42 = vsel %vm3257_vm2, %v2792_v26, %v975_v3  ;;  %vm3258_vm0 = vmmov %vm3252_vm8  ;;  %v1076_v63 = vsel %vm545_vm5, %v2812_v7, %v2816_v56  ;;  %vm3265_vm8 = vcmask 769024   ;;  %v1410_v7 = vsel %vm2239_vm4, %v1878_v51, 0 }
 0x363   :  { %v1021_v52 = vsel %vm3258_vm0, %v2800_v55, %v2798_v29  ;;  %vm3261_vm11 = vmmov %vm3255_vm1  ;;  %v1834_v56 = vcombine.low %v1410_v7, %v1410_v7  ;;  %v1839_v12 = vcombine.low %v1413_v48, %v1413_v48  ;;  %vm3269_vm4 = vcmask 138240  }
 0x364   :  { %v1141_v26 = vsel %vm3261_vm11, %v2766_v4, %v1021_v52  ;;  %vm3262_vm10 = vmmov %vm3258_vm0  ;;  %v1104_v4 = vsel %vm3265_vm8, %v1097_v18, %v1099_v5  ;;  %v1101_v25 = vpop.permute.xlu0 %1100 }
 0x365   :  { %1212 = vrot.lane.b32.xlu1 %v1138_v10, %s1891_s10  ;;  %v1023_v29 = vsel %vm3262_vm10, %v2804_v38, %v2802_v19  ;;  %vm3263_vm15 = vmmov %vm3255_vm1  ;;  %v652_v38 = vld [vmem:[%s3056_s2 + $0x8] sm:$0xff] }
 0x366   :  { %1204 = vrot.lane.b32.xlu0 %v1126_v17, %s1891_s10  ;;  %v1162_v55 = vsel %vm3263_vm15, %v1050_v32, %v1077_v34  ;;  %vm3264_vm13 = vmmov %vm3255_vm1 }
 0x367   :  { %v1147_v35 = vsel %vm3264_vm13, %v2775_v58, %v1023_v29  ;;  %vm3266_vm6 = vmmov %vm3256_vm3 }
 0x368   :  { %v1049_v19 = vsel %vm3266_vm6, %v2806_v15, %v2808_v36  ;;  %vm3267_vm7 = vmmov %vm3255_vm1  ;;  %v1166_v36 = vld [vmem:[%s3057_s4] sm:$0xff] }
 0x369   :  { %1236 = vrot.lane.b32.xlu1 %v1103_v6, %s1891_s10  ;;  %v1159_v58 = vsel %vm3267_vm7, %v1049_v19, %v1076_v63  ;;  %vm3268_vm5 = vmmov %vm3265_vm8 }
 0x36a   :  { %1208 = vrot.lane.b32.xlu0 %v1132_v50, %s1891_s10  ;;  %v1105_v15 = vsel %vm3268_vm5, %v1099_v5, %v1101_v25  ;;  %vm3270_vm12 = vmmov %vm3269_vm4 }
 0x36b   :  { %vm3271_vm1 = vmmov %vm3269_vm4 }
 0x36c   :  { %vm3272_vm3 = vmmov %vm3271_vm1 }
 0x36d   :  { %1194 = vrot.lane.b32.xlu1 %v1111_v2, %s1891_s10  ;;  %vm3273_vm2 = vmmov %vm3271_vm1 }
 0x36e   :  { %1202 = vrot.lane.b32.xlu0 %v1123_v31, %s1891_s10  ;;  %vm3274_vm0 = vmmov %vm3271_vm1 }
 0x36f   :  { %vm3275_vm9 = vmmov %vm3274_vm0 }
 0x370   :  { %vm3276_vm14 = vmmov %vm3274_vm0 }
 0x371   :  { %1198 = vrot.lane.b32.xlu1 %v1117_v46, %s1891_s10  ;;  %vm3277_vm11 = vmmov %vm3274_vm0 }
 0x372   :  { %1216 = vrot.lane.b32.xlu0 %v1144_v16, %s1891_s10  ;;  %vm3278_vm10 = vmmov %vm3274_vm0 }
 0x373   :  { %vm3279_vm15 = vmmov %vm3274_vm0 }
 0x374   :  { %vm3280_vm13 = vmmov %vm3274_vm0 }
 0x375   :  { %1192 = vrot.lane.b32.xlu1 %v1108_v27, %s1891_s10  ;;  %vm3281_vm8 = vmmov %vm3274_vm0 }
 0x376   :  { %1220 = vrot.lane.b32.xlu0 %v1150_v13, %s1891_s10  ;;  %vm3282_vm6 = vmmov %vm3274_vm0 }
 0x377   :  { %vm3283_vm7 = vmmov %vm3274_vm0 }
 0x378   :  { %vm3284_vm5 = vmmov %vm3274_vm0 }
 0x379   :  { %1206 = vrot.lane.b32.xlu1 %v1129_v42, %s1891_s10 }
 0x37a   :  { %1224 = vrot.lane.b32.xlu0 %v1156_v41, %s1891_s10 }
 0x37d   :  { %1214 = vrot.lane.b32.xlu1 %v1141_v26, %s1891_s10 }
 0x37e   :  { %1228 = vrot.lane.b32.xlu0 %v1162_v55, %s1891_s10 }
 0x381   :  { %1218 = vrot.lane.b32.xlu1 %v1147_v35, %s1891_s10 }
 0x382   :  { %1238 = vrot.lane.b32.xlu0 %v1104_v4, %s1891_s10 }
 0x385   :  { %1226 = vrot.lane.b32.xlu1 %v1159_v58, %s1891_s10  ;;  %v852_v58 = vld [vmem:[%s3058_s3] sm:$0xf] }
 0x386   :  { %660 = vperm.xlu0 %1870, %v652_v38  }
 0x389   :  { %1230 = vrot.lane.b32.xlu1 %v2822_v43, %s1891_s10 }
 0x38a   :  { %1448 = vrot.lane.b32.xlu0 %v1834_v56, %s1888_s30 }
 0x38d   :  { %1240 = vrot.lane.b32.xlu1 %v1105_v15, %s1891_s10 }
 0x391   :  { %1169 = vperm.xlu1 %1871, %v1166_v36  }
 0x395   :  { %1475 = vrot.lane.b32.xlu1 %v1839_v12, %s1889_s8 }
 0x3a0   :  { %v1201_v59 = vpop.permute.xlu0 %1200 }
 0x3c8   :  { %v1223_v8 = vpop.permute.xlu0 %1222 }
 0x3cf   :  { %v1233_v43 = vpop.permute.xlu1 %1232 }
 0x3d0   :  { %v1235_v9 = vpop.permute.xlu0 %1234 }
 0x3d1   :  { %v1258_v29 = vsel %vm3283_vm7, %v1233_v43, %v1235_v9 }
 0x3d3   :  { %v1211_v10 = vpop.permute.xlu1 %1210 }
 0x3d4   :  { %v1197_v18 = vpop.permute.xlu0 %1196 }
 0x3d7   :  { %v1213_v17 = vpop.permute.xlu1 %1212 }
 0x3d8   :  { %v1205_v40 = vpop.permute.xlu0 %1204 }
 0x3db   :  { %v1237_v21 = vpop.permute.xlu1 %1236 }
 0x3dc   :  { %v1209_v33 = vpop.permute.xlu0 %1208  ;;  %v1259_v55 = vsel %vm3284_vm5, %v1235_v9, %v1237_v21  ;;  %vm3299_vm5 = vcmp.ne.s16.totalorder %v3220_v28, 0 }
 0x3dd   :  { %v1249_v2 = vsel %vm3272_vm3, %v1209_v33, %v1211_v10  ;;  %vm3288_vm3 = vmmov %vm3274_vm0 }
 0x3df   :  { %v1195_v20 = vpop.permute.xlu1 %1194 }
 0x3e0   :  { %v1243_v6 = vsel %vm3269_vm4, %v1195_v20, %v1197_v18  ;;  %v1203_v50 = vpop.permute.xlu0 %1202  ;;  %vm3285_vm4 = vcmask 1043456  }
 0x3e1   :  { %1294 = vmatprep.subr.bf16.mxu0 %v1243_v6  ;;  %v1246_v61 = vsel %vm3276_vm14, %v1203_v50, %v1205_v40 }
 0x3e3   :  { %v1199_v23 = vpop.permute.xlu1 %1198 }
 0x3e4   :  { %v1244_v0 = vsel %vm3270_vm12, %v1197_v18, %v1199_v23  ;;  %v1245_v45 = vsel %vm3271_vm1, %v1199_v23, %v1201_v59  ;;  %v1217_v24 = vpop.permute.xlu0 %1216  ;;  %vm3286_vm12 = vmmov %vm3274_vm0 }
 0x3e5   :  { %1335 = vmatprep.subr.bf16.mxu1 %v1245_v45  ;;  %vm3287_vm1 = vmmov %vm3285_vm4 }
 0x3e6   :  { %1336 = vmatpush1.bf16.msra.mxu1 %v1244_v0  ;;  %v1283_v4 = vsel %vm3287_vm1, %v1258_v29, 0  ;;  %vm3291_vm14 = vmmov %vm3287_vm1 }
 0x3e7   :  { %1337 = vmatprep.subr.bf16.mxu1 %v1249_v2  ;;  %v1193_v31 = vpop.permute.xlu1 %1192  ;;  %vm3298_vm7 = vmmov %vm3287_vm1 }
 0x3e8   :  { %v1242_v1 = vsel %vm3273_vm2, %v1193_v31, %v1195_v20  ;;  %v1221_v30 = vpop.permute.xlu0 %1220  ;;  %vm3289_vm2 = vmmov %vm3274_vm0 }
 0x3e9   :  { %1295 = vmatpush1.bf16.msra.mxu0 %v1242_v1 }
 0x3eb   :  { %v1207_v46 = vpop.permute.xlu1 %1206 }
 0x3ec   :  { %v1248_v16 = vsel %vm3274_vm0, %v1207_v46, %v1209_v33  ;;  %v1247_v53 = vsel %vm3275_vm9, %v1205_v40, %v1207_v46  ;;  %v1225_v3 = vpop.permute.xlu0 %1224  ;;  %vm1278_vm0 = vcmask 588800   ;;  %vm3290_vm9 = vmmov %vm3289_vm2 }
 0x3ed   :  { %1296 = vmatprep.subr.bf16.mxu0 %v1247_v53  ;;  %1338 = vmatpush1.bf16.msra.mxu1 %v1248_v16  ;;  %v1254_v26 = vsel %vm3282_vm6, %v1223_v8, %v1225_v3  ;;  %vm3297_vm6 = vcmp.ne.s16.totalorder %v3218_v39, 0 }
 0x3ee   :  { %1297 = vmatpush1.bf16.msra.mxu0 %v1246_v61 }
 0x3ef   :  { %v1215_v27 = vpop.permute.xlu1 %1214 }
 0x3f0   :  { %v1250_v13 = vsel %vm3277_vm11, %v1213_v17, %v1215_v27  ;;  %v1251_v60 = vsel %vm3278_vm10, %v1215_v27, %v1217_v24  ;;  %v1229_v41 = vpop.permute.xlu0 %1228  ;;  %vm3292_vm11 = vmmov %vm3287_vm1  ;;  %vm3293_vm10 = vcmp.ne.s16.totalorder %v3214_v14, 0 }
 0x3f1   :  { %1298 = vmatprep.subr.bf16.mxu0 %v1251_v60 }
 0x3f2   :  { %1299 = vmatpush1.bf16.msra.mxu0 %v1250_v13 }
 0x3f3   :  { %v1219_v54 = vpop.permute.xlu1 %1218 }
 0x3f4   :  { %v1252_v42 = vsel %vm3279_vm15, %v1217_v24, %v1219_v54  ;;  %v1253_v52 = vsel %vm3280_vm13, %v1219_v54, %v1221_v30  ;;  %v1239_v5 = vpop.permute.xlu0 %1238  ;;  %vm3294_vm15 = vcmp.ne.s16.totalorder %v3216_v49, 0  ;;  %vm3295_vm13 = vcmp.ne.s16.totalorder %v2281_v11, 0 }
 0x3f5   :  { %1339 = vmatprep.subr.bf16.mxu1 %v1253_v52  ;;  %v1260_v38 = vsel %vm3289_vm2, %v1237_v21, %v1239_v5  ;;  %vm3303_vm2 = vmmov %vm3287_vm1 }
 0x3f6   :  { %1340 = vmatpush1.bf16.msra.mxu1 %v1252_v42  ;;  %v1289_v56 = vsel %vm3291_vm14, %v1260_v38, 0  ;;  %vm3307_vm14 = vmmov %vm3287_vm1 }
 0x3f7   :  { %v1227_v34 = vpop.permute.xlu1 %1226 }
 0x3f8   :  { %v1255_v32 = vsel %vm3281_vm8, %v1225_v3, %v1227_v34  ;;  %v1256_v19 = vsel %vm3288_vm3, %v1227_v34, %v1229_v41  ;;  %vm3296_vm8 = vcmp.ne.s16.totalorder %v2362_v57, 0 }
 0x3f9   :  { %1300 = vmatprep.subr.bf16.mxu0 %v1255_v32 }
 0x3fa   :  { %1301 = vmatpush1.bf16.msra.mxu0 %v1254_v26 }
 0x3fb   :  { %1819 = vmatprep.subr.msk.bf16.mxu0 %vm3285_vm4, %v1259_v55  ;;  %v1231_v35 = vpop.permute.xlu1 %1230  ;;  %vm3300_vm4 = vcmask 7168  }
 0x3fc   :  { %v1257_v63 = vsel %vm3286_vm12, %v1229_v41, %v1231_v35  ;;  %vm3301_vm12 = vmmov %vm3300_vm4 }
 0x3fd   :  { %1341 = vmatprep.subr.bf16.mxu1 %v1257_v63  ;;  %vm3302_vm3 = vmmov %vm3300_vm4 }
 0x3fe   :  { %1303 = vmatpush1.bf16.msra.mxu0 %v1283_v4  ;;  %1342 = vmatpush1.bf16.msra.mxu1 %v1256_v19 }
 0x3ff   :  { %v1241_v51 = vpop.permute.xlu1 %1240 }
 0x400   :  { %v1261_v7 = vsel %vm3290_vm9, %v1239_v5, %v1241_v51  ;;  %vm3306_vm9 = vmmov %vm3287_vm1 }
 0x401   :  { %1820 = vmatmul.mubr.msk.bf16.vlgmr.msra.gmra.mrb[4].mxu0 %vm1278_vm0, %v852_v58  ;;  %1821 = vmatprep.subr.msk.bf16.mxu1 %vm3292_vm11, %v1261_v7  ;;  %vm3308_vm11 = vcmask 130048  }
 0x402   :  { %1344 = vmatpush1.bf16.msra.mxu1 %v1289_v56  ;;  %1627 = vmatprep.mubr.bf16.mxu0 %v3201_v47 }
 0x405   :  { %1822 = vmatmul.mubr.msk.bf16.vlgmr.msra.gmra.mrb[4].mxu1 %vm1278_vm0, %v852_v58  ;;  %v661_v25 = vpop.permute.xlu0 %660  ;;  %vm3304_vm0 = vmmov %vm3302_vm3 }
 0x406   :  { %1670 = vmatprep.mubr.bf16.mxu1 %v3201_v47  ;;  %v783_v48 = vadd.f32 %v2654_v22, %v661_v25  ;;  %v785_v8 = vadd.f32 %v2656_v62, %v661_v25  ;;  %v826_v33 = vadd.f32 %v2660_v37, %v661_v25  ;;  %v828_v50 = vadd.f32 %v2662_v44, %v661_v25 }
 0x409   :  { %v1449_v57 = vpop.permute.xlu0 %1448 }
 0x410   :  { %v1170_v15 = vpop.permute.xlu1 %1169 }
 0x414   :  { %v1476_v26 = vpop.permute.xlu1 %1475 }
 0x4d4   :  { %v1328_v36 = vpop.f32.mrb[4].mxu0 }
 0x4d5   :  { %v1329_v12 = vadd.f32 %v1328_v36, %v1170_v15  ;;  %v1330_v59 = vpop.f32.mrb[5].mxu0 }
 0x4d6   :  { %v1331_v43 = vadd.f32 %v1330_v59, %v1170_v15  ;;  %v1332_v9 = vpop.f32.mrb[6].mxu0 }
 0x4d7   :  { %v1376_v10 = vadd.f32 %v1329_v12, %v783_v48  ;;  %v1333_v18 = vpop.f32.mrb[7].mxu0 }
 0x4d8   :  { %v1377_v17 = vadd.f32 %v1331_v43, %v785_v8  ;;  %v1369_v40 = vpop.f32.mrb[4].mxu1  ;;  %v3305_v8 = vld [vmem:[#allocation5_spill] sm:$0xff] }
 0x4d9   :  { %v1380_v21 = vmax.f32 %v1376_v10, 0.0  ;;  %v1370_v20 = vadd.f32 %v1369_v40, %v1170_v15  ;;  %v1371_v47 = vpop.f32.mrb[5].mxu1  ;;  %v1829_v43 = vcombine.low %v3305_v8, %v3305_v8 }
 0x4da   :  { %v1381_v6 = vmax.f32 %v1377_v17, 0.0  ;;  %v1372_v23 = vadd.f32 %v1371_v47, %v1170_v15  ;;  %v1373_v22 = vpop.f32.mrb[6].mxu1 }
 0x4db   :  { %v1384_v0 = vpack.c.bf16 %v1380_v21, %v1380_v21  ;;  %v1378_v45 = vadd.f32 %v1370_v20, %v826_v33  ;;  %v1374_v24 = vpop.f32.mrb[7].mxu1 }
 0x4dc   :  { %v1385_v62 = vpack.c.bf16 %v1381_v6, %v1381_v6  ;;  %v1849_v2 = vpack.c.bf16 %v1381_v6, %v1380_v21  ;;  %v1379_v31 = vadd.f32 %v1372_v23, %v828_v50 }
 0x4dd   :  { %v1481_v1 = vrot.slane %v1384_v0, 4  ;;  %v1382_v30 = vmax.f32 %v1378_v45, 0.0 }
 0x4de   :  { %1400 = vst [vmem:[#allocation2 + $0x4] sm:$0xff] %v1849_v2  ;;  %v1482_v46 = vrot.slane %v1385_v62, 4  ;;  %v1383_v16 = vmax.f32 %v1379_v31, 0.0  ;;  %v1408_v37 = vsel %vm3293_vm10, %v1849_v2, 0  ;;  %v1411_v14 = vsel %vm3295_vm13, %v1849_v2, 0  ;;  %vm3311_vm13 = vmmov %vm3308_vm11 }
 0x4df   :  { %1485 = vrot.lane.b32.xlu0 %v1481_v1, %s1891_s10  ;;  %v1830_v44 = vcombine.low %v1408_v37, %v1408_v37  ;;  %v1831_v61 = vcombine.high %v1408_v37, %v1408_v37  ;;  %v1836_v60 = vcombine.high %v1411_v14, %v1411_v14  ;;  %v1835_v54 = vcombine.low %v1411_v14, %v1411_v14  ;;  %v1528_v1 = vld [vmem:[%s3060_s6] sm:$0xff] }
 0x4e0   :  { %v1850_v53 = vpack.c.bf16 %v1383_v16, %v1382_v30  ;;  %1487 = vrot.lane.b32.xlu1 %v1482_v46, %s1891_s10  ;;  %v1386_v49 = vpack.c.bf16 %v1382_v30, %v1382_v30  ;;  %v1387_v41 = vpack.c.bf16 %v1383_v16, %v1383_v16  ;;  %v1405_v55 = vsel %vm3297_vm6, %v1849_v2, 0  ;;  %vm3313_vm6 = vmmov %vm3308_vm11  ;;  %v1529_v30 = vld [vmem:[%s3060_s6 + $0x8] sm:$0xff] }
 0x4e1   :  { %v1825_v35 = vcombine.low %v1405_v55, %v1405_v55  ;;  %v1826_v51 = vcombine.high %v1405_v55, %v1405_v55  ;;  %vm3309_vm10 = vcmask 138240  }
 0x4e2   :  { %1401 = vst [vmem:[#allocation2 + $0xc] sm:$0xff] %v1850_v53  ;;  %v1409_v27 = vsel %vm3294_vm15, %v1850_v53, 0  ;;  %v1412_v42 = vsel %vm3296_vm8, %v1850_v53, 0  ;;  %v1483_v11 = vrot.slane %v1386_v49, 4  ;;  %v1484_v32 = vrot.slane %v1387_v41, 4  ;;  %vm3310_vm15 = vmmov %vm3287_vm1 }
 0x4e3   :  { %1440 = vrot.lane.b32.xlu0 %v1830_v44, %s1888_s30  ;;  %v1832_v3 = vcombine.low %v1409_v27, %v1409_v27  ;;  %v1833_v13 = vcombine.high %v1409_v27, %v1409_v27  ;;  %v1838_v52 = vcombine.high %v1412_v42, %v1412_v42  ;;  %v1837_v34 = vcombine.low %v1412_v42, %v1412_v42  ;;  %vm3312_vm8 = vmmov %vm3309_vm10 }
 0x4e4   :  { %1442 = vrot.lane.b32.xlu1 %v1831_v61, %s1888_s30  ;;  %v1406_v38 = vsel %vm3299_vm5, %v1850_v53, 0  ;;  %vm3315_vm5 = vmmov %vm3287_vm1 }
 0x4e5   :  { %v1827_v56 = vcombine.low %v1406_v38, %v1406_v38  ;;  %v1828_v12 = vcombine.high %v1406_v38, %v1406_v38 }
 0x4e7   :  { %1444 = vrot.lane.b32.xlu0 %v1832_v3, %s1888_s30 }
 0x4e8   :  { %1446 = vrot.lane.b32.xlu1 %v1833_v13, %s1888_s30 }
 0x4eb   :  { %1469 = vrot.lane.b32.xlu0 %v1836_v60, %s1889_s8 }
 0x4ec   :  { %1467 = vrot.lane.b32.xlu1 %v1835_v54, %s1889_s8 }
 0x4ef   :  { %1473 = vrot.lane.b32.xlu0 %v1838_v52, %s1889_s8 }
 0x4f0   :  { %1471 = vrot.lane.b32.xlu1 %v1837_v34, %s1889_s8 }
 0x4f3   :  { %1489 = vrot.lane.b32.xlu0 %v1483_v11, %s1891_s10 }
 0x4f4   :  { %1491 = vrot.lane.b32.xlu1 %v1484_v32, %s1891_s10  ;;  %v1877_v32 = vld [vmem:[%s3059_s5] sm:$0xff]  }
 0x551   :  { %v1486_v29 = vpop.permute.xlu0 %1485 }
 0x552   :  { %v1488_v5 = vpop.permute.xlu1 %1487 }
 0x553   :  { %v1493_v21 = vsel %vm3309_vm10, %v1486_v29, %v1488_v5 }
 0x555   :  { %v1441_v63 = vpop.permute.xlu0 %1440 }
 0x556   :  { %v1498_v4 = vsel %vm3298_vm7, %v1825_v35, %v1441_v63  ;;  %v1443_v19 = vpop.permute.xlu1 %1442  ;;  %vm3314_vm7 = vmmov %vm3312_vm8 }
 0x557   :  { %v1450_v58 = vsel %vm3300_vm4, %v1441_v63, %v1443_v19  ;;  %1555 = vrot.lane.b32.xlu0 %v1498_v4, %s1892_s11  ;;  %vm3316_vm4 = vmmov %vm3287_vm1 }
 0x558   :  { %v1501_v15 = vsel %vm3287_vm1, %v1826_v51, %v1450_v58 }
 0x559   :  { %v1445_v7 = vpop.permute.xlu0 %1444 }
 0x55a   :  { %v1451_v25 = vsel %vm3301_vm12, %v1443_v19, %v1445_v7  ;;  %v1447_v39 = vpop.permute.xlu1 %1446  ;;  %vm3317_vm12 = vmmov %vm3313_vm6 }
 0x55b   :  { %v1452_v36 = vsel %vm3302_vm3, %v1445_v7, %v1447_v39  ;;  %1557 = vrot.lane.b32.xlu0 %v1501_v15, %s1892_s11  ;;  %v1504_v48 = vsel %vm3303_vm2, %v1827_v56, %v1451_v25  ;;  %v1453_v28 = vsel %vm3304_vm0, %v1447_v39, %v1449_v57  ;;  %vm3318_vm3 = vmmov %vm3287_vm1  ;;  %vm3319_vm2 = vcmask 908288  }
 0x55c   :  { %1559 = vrot.lane.b32.xlu1 %v1504_v48, %s1892_s11  ;;  %v1507_v10 = vsel %vm3306_vm9, %v1828_v12, %v1452_v36  ;;  %v1510_v18 = vsel %vm3307_vm14, %v1829_v43, %v1453_v28  ;;  %vm3320_vm0 = vmmov %vm3319_vm2 }
 0x55d   :  { %v1470_v59 = vpop.permute.xlu0 %1469  ;;  %vm3321_vm9 = vmmov %vm3320_vm0 }
 0x55e   :  { %v1468_v9 = vpop.permute.xlu1 %1467  ;;  %vm3322_vm14 = vmmov %vm3320_vm0 }
 0x55f   :  { %1561 = vrot.lane.b32.xlu0 %v1507_v10, %s1892_s11  ;;  %v1477_v17 = vsel %vm3308_vm11, %v1468_v9, %v1470_v59  ;;  %v1513_v31 = vsel %vm3318_vm3, %v1468_v9, %v1486_v29  ;;  %vm3323_vm11 = vmmov %vm3320_vm0 }
 0x560   :  { %1563 = vrot.lane.b32.xlu1 %v1510_v18, %s1892_s11  ;;  %v1516_v20 = vsel %vm3310_vm15, %v1477_v17, %v1493_v21  ;;  %vm3324_vm10 = vmmov %vm3320_vm0 }
 0x561   :  { %v1474_v40 = vpop.permute.xlu0 %1473  ;;  %vm3325_vm15 = vmmov %vm3320_vm0 }
 0x562   :  { %v1472_v33 = vpop.permute.xlu1 %1471  ;;  %v1480_v62 = vsel %vm3317_vm12, %v1474_v40, %v1476_v26 }
 0x563   :  { %v1478_v6 = vsel %vm3311_vm13, %v1470_v59, %v1472_v33  ;;  %v1479_v22 = vsel %vm3313_vm6, %v1472_v33, %v1474_v40  ;;  %vm3326_vm13 = vmmov %vm3320_vm0 }
 0x564   :  { %1567 = vrot.lane.b32.xlu1 %v1516_v20, %s1892_s11 }
 0x565   :  { %v1490_v47 = vpop.permute.xlu0 %1489 }
 0x566   :  { %v1494_v50 = vsel %vm3312_vm8, %v1488_v5, %v1490_v47  ;;  %v1492_v23 = vpop.permute.xlu1 %1491  ;;  %vm1591_vm8 = vcmask 261120  }
 0x567   :  { %v1495_v0 = vsel %vm3314_vm7, %v1490_v47, %v1492_v23  ;;  %v1519_v45 = vsel %vm3315_vm5, %v1478_v6, %v1494_v50  ;;  %v1525_v2 = vsel %vm3287_vm1, %v1480_v62, %v1492_v23 }
 0x568   :  { %1569 = vrot.lane.b32.xlu0 %v1519_v45, %s1892_s11  ;;  %v1522_v24 = vsel %vm3316_vm4, %v1479_v22, %v1495_v0 }
 0x569   :  { %1571 = vrot.lane.b32.xlu1 %v1522_v24, %s1892_s11 }
 0x56c   :  { %1573 = vrot.lane.b32.xlu0 %v1525_v2, %s1892_s11 }
 0x56d   :  { %1565 = vrot.lane.b32.xlu1 %v1513_v31, %s1892_s11 }
 0x570   :  { %1532 = vperm.xlu0 %1870, %v1528_v1  }
 0x571   :  { %1537 = vperm.xlu1 %1871, %v1529_v30  }
 0x5c9   :  { %v1556_v46 = vpop.permute.xlu0 %1555 }
 0x5cd   :  { %v1558_v16 = vpop.permute.xlu0 %1557 }
 0x5ce   :  { %v1560_v37 = vpop.permute.xlu1 %1559  ;;  %v1575_v44 = vsel %vm3320_vm0, %v1556_v46, %v1558_v16 }
 0x5cf   :  { %v1576_v53 = vsel %vm3319_vm2, %v1558_v16, %v1560_v37 }
 0x5d0   :  { %1595 = vmatprep.subr.bf16.mxu0 %v1576_v53 }
 0x5d1   :  { %v1562_v61 = vpop.permute.xlu0 %1561  ;;  %1596 = vmatpush1.bf16.msra.mxu0 %v1575_v44 }
 0x5d2   :  { %v1564_v27 = vpop.permute.xlu1 %1563  ;;  %v1577_v13 = vsel %vm3322_vm14, %v1560_v37, %v1562_v61 }
 0x5d3   :  { %v1578_v3 = vsel %vm3321_vm9, %v1562_v61, %v1564_v27 }
 0x5d4   :  { %1638 = vmatprep.subr.bf16.mxu1 %v1578_v3 }
 0x5d5   :  { %1639 = vmatpush1.bf16.msra.mxu1 %v1577_v13 }
 0x5d6   :  { %v1568_v14 = vpop.permute.xlu1 %1567 }
 0x5da   :  { %v1570_v60 = vpop.permute.xlu0 %1569 }
 0x5db   :  { %v1572_v54 = vpop.permute.xlu1 %1571  ;;  %v1580_v42 = vsel %vm3323_vm11, %v1568_v14, %v1570_v60 }
 0x5dc   :  { %1597 = vmatprep.subr.bf16.mxu0 %v1580_v42  ;;  %v1581_v34 = vsel %vm3325_vm15, %v1570_v60, %v1572_v54 }
 0x5de   :  { %v1574_v49 = vpop.permute.xlu0 %1573 }
 0x5df   :  { %v1566_v52 = vpop.permute.xlu1 %1565  ;;  %v1582_v41 = vsel %vm3324_vm10, %v1572_v54, %v1574_v49 }
 0x5e0   :  { %v1579_v11 = vsel %vm3326_vm13, %v1566_v52, %v1568_v14  ;;  %1640 = vmatprep.subr.bf16.mxu1 %v1582_v41 }
 0x5e1   :  { %1598 = vmatpush1.bf16.msra.mxu0 %v1579_v11  ;;  %1641 = vmatpush1.bf16.msra.mxu1 %v1581_v34 }
 0x5e4   :  { %1841 = vmatmul.mubr.msk.bf16.vlgmr.msra.gmra.mrb[8].mxu0 %vm1591_vm8, %v1877_v32  ;;  %1842 = vmatmul.mubr.msk.bf16.vlgmr.msra.gmra.mrb[8].mxu1 %vm1591_vm8, %v1877_v32 }
 0x5ef   :  { %v1533_v57 = vpop.permute.xlu0 %1532 }
 0x5f0   :  { %v1538_v26 = vpop.permute.xlu1 %1537 }
 0x6b7   :  { %v1629_v29 = vpop.f32.mrb[8].mxu0  ;;  %v1672_v55 = vpop.f32.mrb[8].mxu1 }
 0x6b8   :  { %v1630_v5 = vadd.f32 %v1629_v29, %v1533_v57  ;;  %v1631_v35 = vpop.f32.mrb[9].mxu0  ;;  %v1673_v63 = vadd.f32 %v1672_v55, %v1533_v57  ;;  %v1674_v4 = vpop.f32.mrb[9].mxu1 }
 0x6b9   :  { %v1632_v19 = vadd.f32 %v1631_v35, %v1533_v57  ;;  %v1633_v38 = vpop.f32.mrb[10].mxu0  ;;  %v1675_v58 = vadd.f32 %v1674_v4, %v1533_v57  ;;  %v1676_v51 = vpop.f32.mrb[10].mxu1 }
 0x6ba   :  { %v1681_v7 = vmax.f32 %v1630_v5, 0.0  ;;  %v1683_v56 = vmax.f32 %v1673_v63, 0.0  ;;  %v1634_v25 = vadd.f32 %v1633_v38, %v1538_v26  ;;  %v1635_v39 = vpop.f32.mrb[11].mxu0  ;;  %v1677_v15 = vadd.f32 %v1676_v51, %v1538_v26  ;;  %v1678_v36 = vpop.f32.mrb[11].mxu1 }
 0x6bb   :  { %v1682_v48 = vmax.f32 %v1632_v19, 0.0  ;;  %v1684_v28 = vmax.f32 %v1675_v58, 0.0  ;;  %v1636_v12 = vadd.f32 %v1635_v39, %v1538_v26  ;;  %v1679_v59 = vadd.f32 %v1678_v36, %v1538_v26 }
 0x6bc   :  { %v1685_v8 = vmax.f32 %v1634_v25, 0.0  ;;  %v1687_v43 = vmax.f32 %v1677_v15, 0.0 }
 0x6bd   :  { %v1851_v9 = vpack.c.bf16 %v1682_v48, %v1681_v7  ;;  %v1852_v10 = vpack.c.bf16 %v1684_v28, %v1683_v56  ;;  %v1686_v18 = vmax.f32 %v1636_v12, 0.0  ;;  %v1688_v17 = vmax.f32 %v1679_v59, 0.0 }
 0x6bf   :  { %1713 = vst [vmem:[%s3061_s7] sm:$0xff] %v1851_v9  ;;  %1714 = vst [vmem:[%s3061_s7 + $0x8] sm:$0xff] %v1852_v10  ;;  %v1853_v40 = vpack.c.bf16 %v1686_v18, %v1685_v8  ;;  %v1854_v21 = vpack.c.bf16 %v1688_v17, %v1687_v43 }
 0x6c1   :  { %1715 = vst [vmem:[%s3061_s7 + $0x10] sm:$0xff] %v1853_v40  ;;  %1716 = vst [vmem:[%s3061_s7 + $0x18] sm:$0xff] %v1854_v21 }

</bundles_post_ra>
